<compile_context>
chip_gen: v5e
topology: v5e:2x2
jax: 0.10.0
libtpu: 0.0.40
codegen_flags: <defaults>
</compile_context>

<pallas_src>
import jax
import jax.numpy as jnp
from jax.experimental import pallas as pl
from jax.experimental.pallas import tpu as pltpu


# ---------------------------------------------------------------------------
# Encoder: fused GRU over time, grid=(T1,)
# ---------------------------------------------------------------------------
def _encoder_kernel(emb_ref, wih_ref, whh_ref, bih_ref, bhh_ref,
                    enc_out_ref, h_ref):
    t = pl.program_id(0)

    @pl.when(t == 0)
    def _init():
        h_ref[...] = jnp.zeros_like(h_ref)            # resident output doubles as carried state

    x = emb_ref[0]                                    # [B, E] bf16  (this step's embeddings)
    h = h_ref[...]                                    # [B, H] f32   (carried hidden state)
    H = h.shape[-1]

    gi = jnp.dot(x, wih_ref[...], preferred_element_type=jnp.float32) + bih_ref[...]
    gh = jnp.dot(h.astype(jnp.bfloat16), whh_ref[...],
                 preferred_element_type=jnp.float32) + bhh_ref[...]

    i_r, i_z, i_n = gi[:, 0:H], gi[:, H:2 * H], gi[:, 2 * H:3 * H]
    h_r, h_z, h_n = gh[:, 0:H], gh[:, H:2 * H], gh[:, 2 * H:3 * H]
    r = jax.nn.sigmoid(i_r + h_r)
    z = jax.nn.sigmoid(i_z + h_z)
    n = jnp.tanh(i_n + r * h_n)
    h_new = (1.0 - z) * n + z * h

    h_ref[...] = h_new
    enc_out_ref[0] = h_new.astype(jnp.bfloat16)       # lane-dense [B, H] bf16 store at time t


def encoder_forward(emb_seq, wih, whh, bih, bhh):
    """emb_seq: [T1, B, E] bf16 (time-major).

    Returns (enc_out [T1, B, H] bf16, h_last [B, H] f32)."""
    T1, B, E = emb_seq.shape
    H = whh.shape[0]
    const2 = lambda t: (0, 0)
    return pl.pallas_call(
        _encoder_kernel,
        out_shape=(jax.ShapeDtypeStruct((T1, B, H), jnp.bfloat16),
                   jax.ShapeDtypeStruct((B, H), jnp.float32)),
        grid_spec=pltpu.PrefetchScalarGridSpec(
            num_scalar_prefetch=0,
            grid=(T1,),
            in_specs=[
                pl.BlockSpec((1, B, E), lambda t: (t, 0, 0)),   # per-step embeddings
                pl.BlockSpec((E, 3 * H), const2),               # W_ih   (resident)
                pl.BlockSpec((H, 3 * H), const2),               # W_hh   (resident)
                pl.BlockSpec((1, 3 * H), const2),               # b_ih   (resident)
                pl.BlockSpec((1, 3 * H), const2),               # b_hh   (resident)
            ],
            out_specs=[
                pl.BlockSpec((1, B, H), lambda t: (t, 0, 0)),   # enc_out[t]
                pl.BlockSpec((B, H), const2),                   # carried / final hidden state
            ],
        ),
        compiler_params=pltpu.CompilerParams(dimension_semantics=("arbitrary",)),
    )(emb_seq, wih, whh, bih, bhh)


# ---------------------------------------------------------------------------
# Decoder: fused GRU + global attention + projection + NLL, grid=(T2-1,)
# ---------------------------------------------------------------------------
def _decoder_kernel(emb_ref, tgt_ref, h0_ref, enc_ref, img_gi_ref,
                    wih_ref, whh_ref, bhh_ref,
                    wc_ctx_ref, wc_h_ref, bc_ref, wo_ref, bo_ref,
                    loss_ref, h_scr):
    t = pl.program_id(0)

    @pl.when(t == 0)
    def _init():
        h_scr[...] = h0_ref[...]                       # decoder_hidden = encoder final hidden
        loss_ref[...] = jnp.zeros_like(loss_ref)

    x = emb_ref[0]                                     # [B, E] bf16
    h = h_scr[...]                                     # [B, H] f32
    B = h.shape[0]
    H = h.shape[-1]

    # ---- GRU cell (img @ W_ih_img + b_ih hoisted outside the loop) ----
    gi = jnp.dot(x, wih_ref[...], preferred_element_type=jnp.float32) + img_gi_ref[...]
    gh = jnp.dot(h.astype(jnp.bfloat16), whh_ref[...],
                 preferred_element_type=jnp.float32) + bhh_ref[...]
    i_r, i_z, i_n = gi[:, 0:H], gi[:, H:2 * H], gi[:, 2 * H:3 * H]
    h_r, h_z, h_n = gh[:, 0:H], gh[:, H:2 * H], gh[:, 2 * H:3 * H]
    r = jax.nn.sigmoid(i_r + h_r)
    z = jax.nn.sigmoid(i_z + h_z)
    n = jnp.tanh(i_n + r * h_n)
    h_new = (1.0 - z) * n + z * h                      # [B, H] f32
    h_scr[...] = h_new

    # ---- Luong global (dot) attention over encoder outputs — MXU einsums ----
    enc = enc_ref[...]                                 # [B, T1, H] bf16, VMEM-resident
    q = h_new.astype(jnp.bfloat16).reshape(B, 1, H)
    s = jnp.einsum('bqh,bkh->bqk', q, enc,
                   preferred_element_type=jnp.float32)           # [B, 1, T1]
    m = jnp.max(s, axis=-1, keepdims=True)
    e = jnp.exp(s - m)
    p = e * pl.reciprocal(jnp.sum(e, axis=-1, keepdims=True), approx=True)
    ctx = jnp.einsum('bqk,bkh->bqh', p.astype(jnp.bfloat16), enc,
                     preferred_element_type=jnp.float32).reshape(B, H)

    # ---- h_tilde = tanh(ctx @ Wc_ctx + h @ Wc_h + bc)  (split weights, no concat) ----
    h_tilde = jnp.tanh(
        jnp.dot(ctx.astype(jnp.bfloat16), wc_ctx_ref[...],
                preferred_element_type=jnp.float32)
        + jnp.dot(h_new.astype(jnp.bfloat16), wc_h_ref[...],
                  preferred_element_type=jnp.float32)
        + bc_ref[...])

    # ---- output projection + log_softmax + NLL (target picked via iota mask) ----
    logits = jnp.dot(h_tilde.astype(jnp.bfloat16), wo_ref[...],
                     preferred_element_type=jnp.float32) + bo_ref[...]   # [B, V]
    V = logits.shape[-1]
    lm = jnp.max(logits, axis=-1, keepdims=True)
    lse = jnp.log(jnp.sum(jnp.exp(logits - lm), axis=-1, keepdims=True)) + lm
    logp = logits - lse

    tgt = tgt_ref[0]                                   # [B, 1] int32
    col = jax.lax.broadcasted_iota(jnp.int32, (B, V), 1)
    mask = (col == tgt).astype(jnp.float32)
    nll = -jnp.sum(mask * logp, axis=-1, keepdims=True)            # [B, 1]
    step_loss = jnp.sum(nll, axis=0, keepdims=True) * (1.0 / B)    # NLLLoss 'mean' per step

    loss_ref[...] = loss_ref[...] + step_loss          # summed over decoder steps


def decoder_forward(emb_seq, tgt, h0, enc, img_gi,
                    wih, whh, bhh, wc_ctx, wc_h, bc, wo, bo):
    """Returns the total teacher-forced loss as a (1, 1) array."""
    Tdec, B, E = emb_seq.shape
    T1 = enc.shape[1]
    H = whh.shape[0]
    V = wo.shape[1]
    const2 = lambda t: (0, 0)
    const3 = lambda t: (0, 0, 0)
    return pl.pallas_call(
        _decoder_kernel,
        out_shape=jax.ShapeDtypeStruct((1, 1), jnp.float32),
        grid_spec=pltpu.PrefetchScalarGridSpec(
            num_scalar_prefetch=0,
            grid=(Tdec,),
            in_specs=[
                pl.BlockSpec((1, B, E), lambda t: (t, 0, 0)),   # per-step input embeddings
                pl.BlockSpec((1, B, 1), lambda t: (t, 0, 0)),   # per-step target ids
                pl.BlockSpec((B, H), const2),                   # initial hidden (resident)
                pl.BlockSpec((B, T1, H), const3),               # encoder outputs (resident)
                pl.BlockSpec((B, 3 * H), const2),               # img @ W_ih_img + b_ih (hoisted)
                pl.BlockSpec((E, 3 * H), const2),               # W_ih_emb (resident)
                pl.BlockSpec((H, 3 * H), const2),               # W_hh     (resident)
                pl.BlockSpec((1, 3 * H), const2),               # b_hh
                pl.BlockSpec((H, H), const2),                   # Wc_ctx
                pl.BlockSpec((H, H), const2),                   # Wc_h
                pl.BlockSpec((1, H), const2),                   # bc
                pl.BlockSpec((H, V), const2),                   # Wo
                pl.BlockSpec((1, V), const2),                   # bo
            ],
            out_specs=pl.BlockSpec((1, 1), lambda t: (0, 0)),
            scratch_shapes=[pltpu.VMEM((B, H), jnp.float32)],
        ),
        compiler_params=pltpu.CompilerParams(dimension_semantics=("arbitrary",)),
    )(emb_seq, tgt, h0, enc, img_gi, wih, whh, bhh, wc_ctx, wc_h, bc, wo, bo)


# ---------------------------------------------------------------------------
# Parameters + forward (glue: embedding gathers, transposes, hoisted img matmul)
# ---------------------------------------------------------------------------
def init_params(key, vocab, emsize, nhid, img_dim):
    ks = jax.random.split(key, 10)
    s = 0.1

    def rnd(k, shape, dtype=jnp.float32):
        return (s * jax.random.normal(k, shape)).astype(dtype)

    bf = jnp.bfloat16
    return {
        # encoder
        "enc_emb": rnd(ks[0], (vocab, emsize)),
        "enc_wih": rnd(ks[1], (emsize, 3 * nhid), bf),
        "enc_whh": rnd(ks[2], (nhid, 3 * nhid), bf),
        "enc_bih": jnp.zeros((1, 3 * nhid), jnp.float32),
        "enc_bhh": jnp.zeros((1, 3 * nhid), jnp.float32),
        # decoder
        "dec_emb": rnd(ks[3], (vocab, emsize)),
        "dec_wih_emb": rnd(ks[4], (emsize, 3 * nhid), bf),
        "dec_wih_img": rnd(ks[5], (img_dim, 3 * nhid)),     # used outside the kernel (hoisted)
        "dec_whh": rnd(ks[6], (nhid, 3 * nhid), bf),
        "dec_bih": jnp.zeros((1, 3 * nhid), jnp.float32),
        "dec_bhh": jnp.zeros((1, 3 * nhid), jnp.float32),
        "wc_ctx": rnd(ks[7], (nhid, nhid), bf),
        "wc_h": rnd(ks[8], (nhid, nhid), bf),
        "bc": jnp.zeros((1, nhid), jnp.float32),
        "wo": rnd(ks[9], (nhid, vocab), bf),
        "bo": jnp.zeros((1, vocab), jnp.float32),
    }


def seq2seq_forward(params, batch_sentence1, batch_sentence2, img_features):
    """Returns the summed teacher-forced NLL loss (scalar), like the torch module."""
    B, T1 = batch_sentence1.shape

    # ---- encoder (single fused kernel over T1) ----
    emb1 = jnp.take(params["enc_emb"], batch_sentence1, axis=0)            # [B, T1, E]
    emb1_tm = jnp.transpose(emb1, (1, 0, 2)).astype(jnp.bfloat16)          # [T1, B, E]
    enc_out_tm, h0 = encoder_forward(emb1_tm, params["enc_wih"], params["enc_whh"],
                                     params["enc_bih"], params["enc_bhh"])
    # enc_out_tm: [T1, B, H] bf16, h0: [B, H] f32 (already final hidden, no slice/cast needed)
    enc_bt = jnp.transpose(enc_out_tm, (1, 0, 2))                          # [B, T1, H] bf16

    # ---- decoder (single fused kernel over T2-1, teacher forcing) ----
    dec_in_ids = batch_sentence2[:, :-1]                                   # [B, T2-1]
    tgt_ids = batch_sentence2[:, 1:]                                       # [B, T2-1]
    emb2 = jnp.take(params["dec_emb"], dec_in_ids, axis=0)                 # [B, T2-1, E]
    emb2_tm = jnp.transpose(emb2, (1, 0, 2)).astype(jnp.bfloat16)          # [T2-1, B, E]
    tgt_tm = jnp.transpose(tgt_ids, (1, 0))[:, :, None].astype(jnp.int32)  # [T2-1, B, 1]

    # img contribution to the decoder GRU input gates (+ b_ih folded in), hoisted out of the loop
    img_gi = jnp.dot(img_features, params["dec_wih_img"]) + params["dec_bih"]   # [B, 3H] f32

    loss = decoder_forward(emb2_tm, tgt_tm, h0, enc_bt, img_gi,
                           params["dec_wih_emb"], params["dec_whh"], params["dec_bhh"],
                           params["wc_ctx"], params["wc_h"], params["bc"],
                           params["wo"], params["bo"])
    return loss[0, 0]


if __name__ == "__main__":
    # small, (8,128)-aligned deterministic shapes
    V, E, H, F = 128, 128, 128, 128
    B, T1, T2 = 8, 8, 8

    root = jax.random.PRNGKey(0)
    k_params, k_s1, k_s2, k_img = jax.random.split(root, 4)

    params = init_params(k_params, V, E, H, F)
    batch_sentence1 = jax.random.randint(k_s1, (B, T1), 0, V, dtype=jnp.int32)
    batch_sentence2 = jax.random.randint(k_s2, (B, T2), 0, V, dtype=jnp.int32)
    img_features = jax.random.normal(k_img, (B, F), dtype=jnp.float32)

    loss = jax.jit(seq2seq_forward)(params, batch_sentence1, batch_sentence2, img_features)
    jax.block_until_ready(loss)
    assert loss.shape == () and jnp.isfinite(loss)
    print("KERNEL_OK")
</pallas_src>

<mosaic_0001>
module attributes {stable_mosaic.version = 11 : i64} {
  func.func @_encoder_kernel(%arg0: i32, %arg1: memref<1x8x128xbf16, #tpu.memory_space<vmem>>, %arg2: memref<128x384xbf16, #tpu.memory_space<vmem>>, %arg3: memref<128x384xbf16, #tpu.memory_space<vmem>>, %arg4: memref<1x384xf32, #tpu.memory_space<vmem>>, %arg5: memref<1x384xf32, #tpu.memory_space<vmem>>, %arg6: memref<1x8x128xbf16, #tpu.memory_space<vmem>>, %arg7: memref<8x128xf32, #tpu.memory_space<vmem>>) attributes {dimension_semantics = [#tpu.dimension_semantics<arbitrary>], iteration_bounds = array<i64: 8>, scalar_prefetch = 0 : i64, scratch_operands = 0 : i64, tpu.core_type = #tpu.core_type<tc>, window_params = [{transform_indices = @transform_0, window_bounds = array<i64: 1, 8, 128>}, {pipeline_mode = #tpu.pipeline_mode<synchronous>, transform_indices = @transform_1, window_bounds = array<i64: 128, 384>}, {pipeline_mode = #tpu.pipeline_mode<synchronous>, transform_indices = @transform_2, window_bounds = array<i64: 128, 384>}, {pipeline_mode = #tpu.pipeline_mode<synchronous>, transform_indices = @transform_3, window_bounds = array<i64: 1, 384>}, {pipeline_mode = #tpu.pipeline_mode<synchronous>, transform_indices = @transform_4, window_bounds = array<i64: 1, 384>}, {transform_indices = @transform_5, window_bounds = array<i64: 1, 8, 128>}, {pipeline_mode = #tpu.pipeline_mode<synchronous>, transform_indices = @transform_6, window_bounds = array<i64: 8, 128>}]} {
    %c0_i32 = arith.constant 0 : i32
    %0 = arith.cmpi eq, %arg0, %c0_i32 : i32
    %1 = arith.extui %0 : i1 to i32
    %c0_i32_0 = arith.constant 0 : i32
    %2 = arith.cmpi ne, %1, %c0_i32_0 : i32
    scf.if %2 {
      %cst_22 = arith.constant 0.000000e+00 : f32
      %48 = vector.broadcast %cst_22 : f32 to vector<8x128xf32>
      %c0_23 = arith.constant 0 : index
      %c0_24 = arith.constant 0 : index
      %49 = vector.load %arg7[%c0_23, %c0_24] : memref<8x128xf32, #tpu.memory_space<vmem>>, vector<8x128xf32>
      tpu.vector_store %arg7[%c0_23, %c0_24], %48 {strides = array<i32>} : memref<8x128xf32, #tpu.memory_space<vmem>>, vector<8x128xf32>,
    } else {
    }
    %c0 = arith.constant 0 : index
    %c0_1 = arith.constant 0 : index
    %c0_2 = arith.constant 0 : index
    %3 = vector.load %arg1[%c0, %c0_1, %c0_2] : memref<1x8x128xbf16, #tpu.memory_space<vmem>>, vector<1x8x128xbf16>
    %4 = vector.shape_cast %3 : vector<1x8x128xbf16> to vector<8x128xbf16>
    %c0_3 = arith.constant 0 : index
    %c0_4 = arith.constant 0 : index
    %5 = vector.load %arg7[%c0_3, %c0_4] : memref<8x128xf32, #tpu.memory_space<vmem>>, vector<8x128xf32>
    %c0_5 = arith.constant 0 : index
    %c0_6 = arith.constant 0 : index
    %6 = vector.load %arg2[%c0_5, %c0_6] : memref<128x384xbf16, #tpu.memory_space<vmem>>, vector<128x384xbf16>
    %cst = arith.constant dense<0.000000e+00> : vector<8x384xf32>
    %7 = tpu.matmul %4, %6, %cst {dimension_numbers = #tpu.dot_dimension_numbers<[1], [0], [0], [1], [0, 0, 1, 1], [], []>} : vector<8x128xbf16>, vector<128x384xbf16>, vector<8x384xf32> -> vector<8x384xf32>
    %c0_7 = arith.constant 0 : index
    %c0_8 = arith.constant 0 : index
    %8 = vector.load %arg4[%c0_7, %c0_8] : memref<1x384xf32, #tpu.memory_space<vmem>>, vector<1x384xf32>
    %9 = vector.broadcast %8 : vector<1x384xf32> to vector<8x384xf32>
    %10 = arith.addf %7, %9 : vector<8x384xf32>
    %11 = arith.truncf %5 : vector<8x128xf32> to vector<8x128xbf16>
    %c0_9 = arith.constant 0 : index
    %c0_10 = arith.constant 0 : index
    %12 = vector.load %arg3[%c0_9, %c0_10] : memref<128x384xbf16, #tpu.memory_space<vmem>>, vector<128x384xbf16>
    %cst_11 = arith.constant dense<0.000000e+00> : vector<8x384xf32>
    %13 = tpu.matmul %11, %12, %cst_11 {dimension_numbers = #tpu.dot_dimension_numbers<[1], [0], [0], [1], [0, 0, 1, 1], [], []>} : vector<8x128xbf16>, vector<128x384xbf16>, vector<8x384xf32> -> vector<8x384xf32>
    %c0_12 = arith.constant 0 : index
    %c0_13 = arith.constant 0 : index
    %14 = vector.load %arg5[%c0_12, %c0_13] : memref<1x384xf32, #tpu.memory_space<vmem>>, vector<1x384xf32>
    %15 = vector.broadcast %14 : vector<1x384xf32> to vector<8x384xf32>
    %16 = arith.addf %13, %15 : vector<8x384xf32>
    %17 = vector.extract_strided_slice %10 {offsets = [0, 0], sizes = [8, 128], strides = [1, 1]} : vector<8x384xf32> to vector<8x128xf32>
    %18 = vector.extract_strided_slice %10 {offsets = [0, 128], sizes = [8, 128], strides = [1, 1]} : vector<8x384xf32> to vector<8x128xf32>
    %19 = vector.extract_strided_slice %10 {offsets = [0, 256], sizes = [8, 128], strides = [1, 1]} : vector<8x384xf32> to vector<8x128xf32>
    %20 = vector.extract_strided_slice %16 {offsets = [0, 0], sizes = [8, 128], strides = [1, 1]} : vector<8x384xf32> to vector<8x128xf32>
    %21 = vector.extract_strided_slice %16 {offsets = [0, 128], sizes = [8, 128], strides = [1, 1]} : vector<8x384xf32> to vector<8x128xf32>
    %22 = vector.extract_strided_slice %16 {offsets = [0, 256], sizes = [8, 128], strides = [1, 1]} : vector<8x384xf32> to vector<8x128xf32>
    %23 = arith.addf %17, %20 : vector<8x128xf32>
    %24 = arith.negf %23 : vector<8x128xf32>
    %25 = math.exp %24 : vector<8x128xf32>
    %cst_14 = arith.constant 1.000000e+00 : f32
    %26 = vector.broadcast %cst_14 : f32 to vector<8x128xf32>
    %27 = arith.addf %26, %25 : vector<8x128xf32>
    %28 = arith.divf %26, %27 : vector<8x128xf32>
    %29 = arith.addf %18, %21 : vector<8x128xf32>
    %30 = arith.negf %29 : vector<8x128xf32>
    %31 = math.exp %30 : vector<8x128xf32>
    %cst_15 = arith.constant 1.000000e+00 : f32
    %32 = vector.broadcast %cst_15 : f32 to vector<8x128xf32>
    %33 = arith.addf %32, %31 : vector<8x128xf32>
    %34 = arith.divf %32, %33 : vector<8x128xf32>
    %35 = arith.mulf %28, %22 : vector<8x128xf32>
    %36 = arith.addf %19, %35 : vector<8x128xf32>
    %37 = math.tanh %36 : vector<8x128xf32>
    %cst_16 = arith.constant 1.000000e+00 : f32
    %38 = vector.broadcast %cst_16 : f32 to vector<8x128xf32>
    %39 = arith.subf %38, %34 : vector<8x128xf32>
    %40 = arith.mulf %39, %37 : vector<8x128xf32>
    %41 = arith.mulf %34, %5 : vector<8x128xf32>
    %42 = arith.addf %40, %41 : vector<8x128xf32>
    %c0_17 = arith.constant 0 : index
    %c0_18 = arith.constant 0 : index
    %43 = vector.load %arg7[%c0_17, %c0_18] : memref<8x128xf32, #tpu.memory_space<vmem>>, vector<8x128xf32>
    tpu.vector_store %arg7[%c0_17, %c0_18], %42 {strides = array<i32>} : memref<8x128xf32, #tpu.memory_space<vmem>>, vector<8x128xf32>,
    %44 = arith.truncf %42 : vector<8x128xf32> to vector<8x128xbf16>
    %c0_19 = arith.constant 0 : index
    %c0_20 = arith.constant 0 : index
    %c0_21 = arith.constant 0 : index
    %45 = vector.load %arg6[%c0_19, %c0_20, %c0_21] : memref<1x8x128xbf16, #tpu.memory_space<vmem>>, vector<1x8x128xbf16>
    %46 = vector.shape_cast %45 : vector<1x8x128xbf16> to vector<8x128xbf16>
    %47 = vector.shape_cast %44 : vector<8x128xbf16> to vector<1x8x128xbf16>
    tpu.vector_store %arg6[%c0_19, %c0_20, %c0_21], %47 {strides = array<i32>} : memref<1x8x128xbf16, #tpu.memory_space<vmem>>, vector<1x8x128xbf16>,
    return
  }
  func.func @transform_0(%arg0: i32) -> (i32, i32, i32) {
    %c0_i32 = arith.constant 0 : i32
    %c0_i32_0 = arith.constant 0 : i32
    %c0_i32_1 = arith.constant 0 : i32
    return %arg0, %c0_i32, %c0_i32_0 : i32, i32, i32
  }
  func.func @transform_1(%arg0: i32) -> (i32, i32) {
    %c0_i32 = arith.constant 0 : i32
    %c0_i32_0 = arith.constant 0 : i32
    %c0_i32_1 = arith.constant 0 : i32
    return %c0_i32, %c0_i32_0 : i32, i32
  }
  func.func @transform_2(%arg0: i32) -> (i32, i32) {
    %c0_i32 = arith.constant 0 : i32
    %c0_i32_0 = arith.constant 0 : i32
    %c0_i32_1 = arith.constant 0 : i32
    return %c0_i32, %c0_i32_0 : i32, i32
  }
  func.func @transform_3(%arg0: i32) -> (i32, i32) {
    %c0_i32 = arith.constant 0 : i32
    %c0_i32_0 = arith.constant 0 : i32
    %c0_i32_1 = arith.constant 0 : i32
    return %c0_i32, %c0_i32_0 : i32, i32
  }
  func.func @transform_4(%arg0: i32) -> (i32, i32) {
    %c0_i32 = arith.constant 0 : i32
    %c0_i32_0 = arith.constant 0 : i32
    %c0_i32_1 = arith.constant 0 : i32
    return %c0_i32, %c0_i32_0 : i32, i32
  }
  func.func @transform_5(%arg0: i32) -> (i32, i32, i32) {
    %c0_i32 = arith.constant 0 : i32
    %c0_i32_0 = arith.constant 0 : i32
    %c0_i32_1 = arith.constant 0 : i32
    return %arg0, %c0_i32, %c0_i32_0 : i32, i32, i32
  }
  func.func @transform_6(%arg0: i32) -> (i32, i32) {
    %c0_i32 = arith.constant 0 : i32
    %c0_i32_0 = arith.constant 0 : i32
    %c0_i32_1 = arith.constant 0 : i32
    return %c0_i32, %c0_i32_0 : i32, i32
  }
}

module attributes {stable_mosaic.version = 11 : i64} {
  func.func @_decoder_kernel(%arg0: i32, %arg1: memref<1x8x128xbf16, #tpu.memory_space<vmem>>, %arg2: memref<1x8x1xi32, #tpu.memory_space<vmem>>, %arg3: memref<8x128xf32, #tpu.memory_space<vmem>>, %arg4: memref<8x8x128xbf16, #tpu.memory_space<vmem>>, %arg5: memref<8x384xf32, #tpu.memory_space<vmem>>, %arg6: memref<128x384xbf16, #tpu.memory_space<vmem>>, %arg7: memref<128x384xbf16, #tpu.memory_space<vmem>>, %arg8: memref<1x384xf32, #tpu.memory_space<vmem>>, %arg9: memref<128x128xbf16, #tpu.memory_space<vmem>>, %arg10: memref<128x128xbf16, #tpu.memory_space<vmem>>, %arg11: memref<1x128xf32, #tpu.memory_space<vmem>>, %arg12: memref<128x128xbf16, #tpu.memory_space<vmem>>, %arg13: memref<1x128xf32, #tpu.memory_space<vmem>>, %arg14: memref<1x1xf32, #tpu.memory_space<vmem>>, %arg15: memref<8x128xf32, #tpu.memory_space<vmem>>) attributes {dimension_semantics = [#tpu.dimension_semantics<arbitrary>], iteration_bounds = array<i64: 7>, scalar_prefetch = 0 : i64, scratch_operands = 1 : i64, tpu.core_type = #tpu.core_type<tc>, window_params = [{transform_indices = @transform_0, window_bounds = array<i64: 1, 8, 128>}, {transform_indices = @transform_1, window_bounds = array<i64: 1, 8, 1>}, {pipeline_mode = #tpu.pipeline_mode<synchronous>, transform_indices = @transform_2, window_bounds = array<i64: 8, 128>}, {pipeline_mode = #tpu.pipeline_mode<synchronous>, transform_indices = @transform_3, window_bounds = array<i64: 8, 8, 128>}, {pipeline_mode = #tpu.pipeline_mode<synchronous>, transform_indices = @transform_4, window_bounds = array<i64: 8, 384>}, {pipeline_mode = #tpu.pipeline_mode<synchronous>, transform_indices = @transform_5, window_bounds = array<i64: 128, 384>}, {pipeline_mode = #tpu.pipeline_mode<synchronous>, transform_indices = @transform_6, window_bounds = array<i64: 128, 384>}, {pipeline_mode = #tpu.pipeline_mode<synchronous>, transform_indices = @transform_7, window_bounds = array<i64: 1, 384>}, {pipeline_mode = #tpu.pipeline_mode<synchronous>, transform_indices = @transform_8, window_bounds = array<i64: 128, 128>}, {pipeline_mode = #tpu.pipeline_mode<synchronous>, transform_indices = @transform_9, window_bounds = array<i64: 128, 128>}, {pipeline_mode = #tpu.pipeline_mode<synchronous>, transform_indices = @transform_10, window_bounds = array<i64: 1, 128>}, {pipeline_mode = #tpu.pipeline_mode<synchronous>, transform_indices = @transform_11, window_bounds = array<i64: 128, 128>}, {pipeline_mode = #tpu.pipeline_mode<synchronous>, transform_indices = @transform_12, window_bounds = array<i64: 1, 128>}, {pipeline_mode = #tpu.pipeline_mode<synchronous>, transform_indices = @transform_13, window_bounds = array<i64: 1, 1>}]} {
    %c0_i32 = arith.constant 0 : i32
    %0 = arith.cmpi eq, %arg0, %c0_i32 : i32
    %1 = arith.extui %0 : i1 to i32
    %c0_i32_0 = arith.constant 0 : i32
    %2 = arith.cmpi ne, %1, %c0_i32_0 : i32
    scf.if %2 {
      %c0_52 = arith.constant 0 : index
      %c0_53 = arith.constant 0 : index
      %107 = vector.load %arg3[%c0_52, %c0_53] : memref<8x128xf32, #tpu.memory_space<vmem>>, vector<8x128xf32>
      %c0_54 = arith.constant 0 : index
      %c0_55 = arith.constant 0 : index
      %108 = vector.load %arg15[%c0_54, %c0_55] : memref<8x128xf32, #tpu.memory_space<vmem>>, vector<8x128xf32>
      tpu.vector_store %arg15[%c0_54, %c0_55], %107 {strides = array<i32>} : memref<8x128xf32, #tpu.memory_space<vmem>>, vector<8x128xf32>,
      %cst_56 = arith.constant 0.000000e+00 : f32
      %109 = vector.broadcast %cst_56 : f32 to vector<1x1xf32>
      %c0_57 = arith.constant 0 : index
      %c0_58 = arith.constant 0 : index
      %110 = vector.load %arg14[%c0_57, %c0_58] : memref<1x1xf32, #tpu.memory_space<vmem>>, vector<1x1xf32>
      tpu.vector_store %arg14[%c0_57, %c0_58], %109 {strides = array<i32>} : memref<1x1xf32, #tpu.memory_space<vmem>>, vector<1x1xf32>,
    } else {
    }
    %c0 = arith.constant 0 : index
    %c0_1 = arith.constant 0 : index
    %c0_2 = arith.constant 0 : index
    %3 = vector.load %arg1[%c0, %c0_1, %c0_2] : memref<1x8x128xbf16, #tpu.memory_space<vmem>>, vector<1x8x128xbf16>
    %4 = vector.shape_cast %3 : vector<1x8x128xbf16> to vector<8x128xbf16>
    %c0_3 = arith.constant 0 : index
    %c0_4 = arith.constant 0 : index
    %5 = vector.load %arg15[%c0_3, %c0_4] : memref<8x128xf32, #tpu.memory_space<vmem>>, vector<8x128xf32>
    %c0_5 = arith.constant 0 : index
    %c0_6 = arith.constant 0 : index
    %6 = vector.load %arg6[%c0_5, %c0_6] : memref<128x384xbf16, #tpu.memory_space<vmem>>, vector<128x384xbf16>
    %cst = arith.constant dense<0.000000e+00> : vector<8x384xf32>
    %7 = tpu.matmul %4, %6, %cst {dimension_numbers = #tpu.dot_dimension_numbers<[1], [0], [0], [1], [0, 0, 1, 1], [], []>} : vector<8x128xbf16>, vector<128x384xbf16>, vector<8x384xf32> -> vector<8x384xf32>
    %c0_7 = arith.constant 0 : index
    %c0_8 = arith.constant 0 : index
    %8 = vector.load %arg5[%c0_7, %c0_8] : memref<8x384xf32, #tpu.memory_space<vmem>>, vector<8x384xf32>
    %9 = arith.addf %7, %8 : vector<8x384xf32>
    %10 = arith.truncf %5 : vector<8x128xf32> to vector<8x128xbf16>
    %c0_9 = arith.constant 0 : index
    %c0_10 = arith.constant 0 : index
    %11 = vector.load %arg7[%c0_9, %c0_10] : memref<128x384xbf16, #tpu.memory_space<vmem>>, vector<128x384xbf16>
    %cst_11 = arith.constant dense<0.000000e+00> : vector<8x384xf32>
    %12 = tpu.matmul %10, %11, %cst_11 {dimension_numbers = #tpu.dot_dimension_numbers<[1], [0], [0], [1], [0, 0, 1, 1], [], []>} : vector<8x128xbf16>, vector<128x384xbf16>, vector<8x384xf32> -> vector<8x384xf32>
    %c0_12 = arith.constant 0 : index
    %c0_13 = arith.constant 0 : index
    %13 = vector.load %arg8[%c0_12, %c0_13] : memref<1x384xf32, #tpu.memory_space<vmem>>, vector<1x384xf32>
    %14 = vector.broadcast %13 : vector<1x384xf32> to vector<8x384xf32>
    %15 = arith.addf %12, %14 : vector<8x384xf32>
    %16 = vector.extract_strided_slice %9 {offsets = [0, 0], sizes = [8, 128], strides = [1, 1]} : vector<8x384xf32> to vector<8x128xf32>
    %17 = vector.extract_strided_slice %9 {offsets = [0, 128], sizes = [8, 128], strides = [1, 1]} : vector<8x384xf32> to vector<8x128xf32>
    %18 = vector.extract_strided_slice %9 {offsets = [0, 256], sizes = [8, 128], strides = [1, 1]} : vector<8x384xf32> to vector<8x128xf32>
    %19 = vector.extract_strided_slice %15 {offsets = [0, 0], sizes = [8, 128], strides = [1, 1]} : vector<8x384xf32> to vector<8x128xf32>
    %20 = vector.extract_strided_slice %15 {offsets = [0, 128], sizes = [8, 128], strides = [1, 1]} : vector<8x384xf32> to vector<8x128xf32>
    %21 = vector.extract_strided_slice %15 {offsets = [0, 256], sizes = [8, 128], strides = [1, 1]} : vector<8x384xf32> to vector<8x128xf32>
    %22 = arith.addf %16, %19 : vector<8x128xf32>
    %23 = arith.negf %22 : vector<8x128xf32>
    %24 = math.exp %23 : vector<8x128xf32>
    %cst_14 = arith.constant 1.000000e+00 : f32
    %25 = vector.broadcast %cst_14 : f32 to vector<8x128xf32>
    %26 = arith.addf %25, %24 : vector<8x128xf32>
    %27 = arith.divf %25, %26 : vector<8x128xf32>
    %28 = arith.addf %17, %20 : vector<8x128xf32>
    %29 = arith.negf %28 : vector<8x128xf32>
    %30 = math.exp %29 : vector<8x128xf32>
    %cst_15 = arith.constant 1.000000e+00 : f32
    %31 = vector.broadcast %cst_15 : f32 to vector<8x128xf32>
    %32 = arith.addf %31, %30 : vector<8x128xf32>
    %33 = arith.divf %31, %32 : vector<8x128xf32>
    %34 = arith.mulf %27, %21 : vector<8x128xf32>
    %35 = arith.addf %18, %34 : vector<8x128xf32>
    %36 = math.tanh %35 : vector<8x128xf32>
    %cst_16 = arith.constant 1.000000e+00 : f32
    %37 = vector.broadcast %cst_16 : f32 to vector<8x128xf32>
    %38 = arith.subf %37, %33 : vector<8x128xf32>
    %39 = arith.mulf %38, %36 : vector<8x128xf32>
    %40 = arith.mulf %33, %5 : vector<8x128xf32>
    %41 = arith.addf %39, %40 : vector<8x128xf32>
    %c0_17 = arith.constant 0 : index
    %c0_18 = arith.constant 0 : index
    %42 = vector.load %arg15[%c0_17, %c0_18] : memref<8x128xf32, #tpu.memory_space<vmem>>, vector<8x128xf32>
    tpu.vector_store %arg15[%c0_17, %c0_18], %41 {strides = array<i32>} : memref<8x128xf32, #tpu.memory_space<vmem>>, vector<8x128xf32>,
    %c0_19 = arith.constant 0 : index
    %c0_20 = arith.constant 0 : index
    %c0_21 = arith.constant 0 : index
    %43 = vector.load %arg4[%c0_19, %c0_20, %c0_21] : memref<8x8x128xbf16, #tpu.memory_space<vmem>>, vector<8x8x128xbf16>
    %44 = arith.truncf %41 : vector<8x128xf32> to vector<8x128xbf16>
    %45 = vector.shape_cast %44 : vector<8x128xbf16> to vector<8x1x128xbf16>
    "tpu.trace_start"() <{level = 10 : i32, message = "bqh,bkh->bqk"}> : () -> ()
    %cst_22 = arith.constant dense<0.000000e+00> : vector<8x1x8xf32>
    %46 = tpu.matmul %45, %43, %cst_22 {dimension_numbers = #tpu.dot_dimension_numbers<[2], [2], [1], [1], [0, 0, 0, 1, 1, 1], [0], [0]>} : vector<8x1x128xbf16>, vector<8x8x128xbf16>, vector<8x1x8xf32> -> vector<8x1x8xf32>
    "tpu.trace_stop"() : () -> ()
    %cst_23 = arith.constant dense<0xFF800000> : vector<8x1xf32>
    %47 = vector.multi_reduction <maximumf>, %46, %cst_23 [2] : vector<8x1x8xf32> to vector<8x1xf32>
    %48 = vector.shape_cast %47 : vector<8x1xf32> to vector<8x1x1xf32>
    %49 = vector.broadcast %48 : vector<8x1x1xf32> to vector<8x1x8xf32>
    %50 = arith.subf %46, %49 : vector<8x1x8xf32>
    %51 = math.exp %50 : vector<8x1x8xf32>
    %cst_24 = arith.constant dense<0.000000e+00> : vector<8x1xf32>
    %52 = vector.multi_reduction <add>, %51, %cst_24 [2] : vector<8x1x8xf32> to vector<8x1xf32>
    %53 = vector.shape_cast %52 : vector<8x1xf32> to vector<8x1x1xf32>
    %54 = tpu.reciprocal %53 {approx = true} : vector<8x1x1xf32> -> vector<8x1x1xf32>
    %55 = vector.broadcast %54 : vector<8x1x1xf32> to vector<8x1x8xf32>
    %56 = arith.mulf %51, %55 : vector<8x1x8xf32>
    %57 = arith.truncf %56 : vector<8x1x8xf32> to vector<8x1x8xbf16>
    "tpu.trace_start"() <{level = 10 : i32, message = "bqk,bkh->bqh"}> : () -> ()
    %cst_25 = arith.constant dense<0.000000e+00> : vector<8x1x128xf32>
    %58 = tpu.matmul %57, %43, %cst_25 {dimension_numbers = #tpu.dot_dimension_numbers<[2], [1], [1], [2], [0, 0, 0, 1, 1, 2], [0], [0]>} : vector<8x1x8xbf16>, vector<8x8x128xbf16>, vector<8x1x128xf32> -> vector<8x1x128xf32>
    "tpu.trace_stop"() : () -> ()
    %59 = vector.shape_cast %58 : vector<8x1x128xf32> to vector<8x128xf32>
    %60 = arith.truncf %59 : vector<8x128xf32> to vector<8x128xbf16>
    %c0_26 = arith.constant 0 : index
    %c0_27 = arith.constant 0 : index
    %61 = vector.load %arg9[%c0_26, %c0_27] : memref<128x128xbf16, #tpu.memory_space<vmem>>, vector<128x128xbf16>
    %cst_28 = arith.constant dense<0.000000e+00> : vector<8x128xf32>
    %62 = tpu.matmul %60, %61, %cst_28 {dimension_numbers = #tpu.dot_dimension_numbers<[1], [0], [0], [1], [0, 0, 1, 1], [], []>} : vector<8x128xbf16>, vector<128x128xbf16>, vector<8x128xf32> -> vector<8x128xf32>
    %63 = arith.truncf %41 : vector<8x128xf32> to vector<8x128xbf16>
    %c0_29 = arith.constant 0 : index
    %c0_30 = arith.constant 0 : index
    %64 = vector.load %arg10[%c0_29, %c0_30] : memref<128x128xbf16, #tpu.memory_space<vmem>>, vector<128x128xbf16>
    %cst_31 = arith.constant dense<0.000000e+00> : vector<8x128xf32>
    %65 = tpu.matmul %63, %64, %cst_31 {dimension_numbers = #tpu.dot_dimension_numbers<[1], [0], [0], [1], [0, 0, 1, 1], [], []>} : vector<8x128xbf16>, vector<128x128xbf16>, vector<8x128xf32> -> vector<8x128xf32>
    %66 = arith.addf %62, %65 : vector<8x128xf32>
    %c0_32 = arith.constant 0 : index
    %c0_33 = arith.constant 0 : index
    %67 = vector.load %arg11[%c0_32, %c0_33] : memref<1x128xf32, #tpu.memory_space<vmem>>, vector<1x128xf32>
    %68 = vector.broadcast %67 : vector<1x128xf32> to vector<8x128xf32>
    %69 = arith.addf %66, %68 : vector<8x128xf32>
    %70 = math.tanh %69 : vector<8x128xf32>
    %71 = arith.truncf %70 : vector<8x128xf32> to vector<8x128xbf16>
    %c0_34 = arith.constant 0 : index
    %c0_35 = arith.constant 0 : index
    %72 = vector.load %arg12[%c0_34, %c0_35] : memref<128x128xbf16, #tpu.memory_space<vmem>>, vector<128x128xbf16>
    %cst_36 = arith.constant dense<0.000000e+00> : vector<8x128xf32>
    %73 = tpu.matmul %71, %72, %cst_36 {dimension_numbers = #tpu.dot_dimension_numbers<[1], [0], [0], [1], [0, 0, 1, 1], [], []>} : vector<8x128xbf16>, vector<128x128xbf16>, vector<8x128xf32> -> vector<8x128xf32>
    %c0_37 = arith.constant 0 : index
    %c0_38 = arith.constant 0 : index
    %74 = vector.load %arg13[%c0_37, %c0_38] : memref<1x128xf32, #tpu.memory_space<vmem>>, vector<1x128xf32>
    %75 = vector.broadcast %74 : vector<1x128xf32> to vector<8x128xf32>
    %76 = arith.addf %73, %75 : vector<8x128xf32>
    %cst_39 = arith.constant dense<0xFF800000> : vector<8xf32>
    %77 = vector.multi_reduction <maximumf>, %76, %cst_39 [1] : vector<8x128xf32> to vector<8xf32>
    %78 = vector.shape_cast %77 : vector<8xf32> to vector<8x1xf32>
    %79 = vector.broadcast %78 : vector<8x1xf32> to vector<8x128xf32>
    %80 = arith.subf %76, %79 : vector<8x128xf32>
    %81 = math.exp %80 : vector<8x128xf32>
    %cst_40 = arith.constant dense<0.000000e+00> : vector<8xf32>
    %82 = vector.multi_reduction <add>, %81, %cst_40 [1] : vector<8x128xf32> to vector<8xf32>
    %83 = vector.shape_cast %82 : vector<8xf32> to vector<8x1xf32>
    %84 = math.log %83 : vector<8x1xf32>
    %85 = arith.addf %84, %78 : vector<8x1xf32>
    %86 = vector.broadcast %85 : vector<8x1xf32> to vector<8x128xf32>
    %87 = arith.subf %76, %86 : vector<8x128xf32>
    %c0_41 = arith.constant 0 : index
    %c0_42 = arith.constant 0 : index
    %c0_43 = arith.constant 0 : index
    %88 = vector.load %arg2[%c0_41, %c0_42, %c0_43] : memref<1x8x1xi32, #tpu.memory_space<vmem>>, vector<1x8x1xi32>
    %89 = vector.shape_cast %88 : vector<1x8x1xi32> to vector<8x1xi32>
    %90 = tpu.iota {dimensions = array<i32: 1>} : vector<8x128xi32>
    %91 = vector.broadcast %89 : vector<8x1xi32> to vector<8x128xi32>
    %92 = arith.cmpi eq, %90, %91 : vector<8x128xi32>
    %93 = arith.extui %92 : vector<8x128xi1> to vector<8x128xi32>
    %94 = arith.sitofp %93 : vector<8x128xi32> to vector<8x128xf32>
    %95 = arith.mulf %94, %87 : vector<8x128xf32>
    %cst_44 = arith.constant dense<0.000000e+00> : vector<8xf32>
    %96 = vector.multi_reduction <add>, %95, %cst_44 [1] : vector<8x128xf32> to vector<8xf32>
    %97 = vector.shape_cast %96 : vector<8xf32> to vector<8x1xf32>
    %cst_45 = arith.constant 0.000000e+00 : f32
    %98 = vector.broadcast %cst_45 : f32 to vector<8x1xf32>
    %99 = arith.subf %98, %97 : vector<8x1xf32>
    %cst_46 = arith.constant dense<0.000000e+00> : vector<1xf32>
    %100 = vector.multi_reduction <add>, %99, %cst_46 [0] : vector<8x1xf32> to vector<1xf32>
    %101 = vector.shape_cast %100 : vector<1xf32> to vector<1x1xf32>
    %cst_47 = arith.constant 1.250000e-01 : f32
    %102 = vector.broadcast %cst_47 : f32 to vector<1x1xf32>
    %103 = arith.mulf %101, %102 : vector<1x1xf32>
    %c0_48 = arith.constant 0 : index
    %c0_49 = arith.constant 0 : index
    %104 = vector.load %arg14[%c0_48, %c0_49] : memref<1x1xf32, #tpu.memory_space<vmem>>, vector<1x1xf32>
    %105 = arith.addf %104, %103 : vector<1x1xf32>
    %c0_50 = arith.constant 0 : index
    %c0_51 = arith.constant 0 : index
    %106 = vector.load %arg14[%c0_50, %c0_51] : memref<1x1xf32, #tpu.memory_space<vmem>>, vector<1x1xf32>
    tpu.vector_store %arg14[%c0_50, %c0_51], %105 {strides = array<i32>} : memref<1x1xf32, #tpu.memory_space<vmem>>, vector<1x1xf32>,
    return
  }
  func.func @transform_0(%arg0: i32) -> (i32, i32, i32) {
    %c0_i32 = arith.constant 0 : i32
    %c0_i32_0 = arith.constant 0 : i32
    %c0_i32_1 = arith.constant 0 : i32
    return %arg0, %c0_i32, %c0_i32_0 : i32, i32, i32
  }
  func.func @transform_1(%arg0: i32) -> (i32, i32, i32) {
    %c0_i32 = arith.constant 0 : i32
    %c0_i32_0 = arith.constant 0 : i32
    %c0_i32_1 = arith.constant 0 : i32
    return %arg0, %c0_i32, %c0_i32_0 : i32, i32, i32
  }
  func.func @transform_2(%arg0: i32) -> (i32, i32) {
    %c0_i32 = arith.constant 0 : i32
    %c0_i32_0 = arith.constant 0 : i32
    %c0_i32_1 = arith.constant 0 : i32
    return %c0_i32, %c0_i32_0 : i32, i32
  }
  func.func @transform_3(%arg0: i32) -> (i32, i32, i32) {
    %c0_i32 = arith.constant 0 : i32
    %c0_i32_0 = arith.constant 0 : i32
    %c0_i32_1 = arith.constant 0 : i32
    %c0_i32_2 = arith.constant 0 : i32
    return %c0_i32, %c0_i32_0, %c0_i32_1 : i32, i32, i32
  }
  func.func @transform_4(%arg0: i32) -> (i32, i32) {
    %c0_i32 = arith.constant 0 : i32
    %c0_i32_0 = arith.constant 0 : i32
    %c0_i32_1 = arith.constant 0 : i32
    return %c0_i32, %c0_i32_0 : i32, i32
  }
  func.func @transform_5(%arg0: i32) -> (i32, i32) {
    %c0_i32 = arith.constant 0 : i32
    %c0_i32_0 = arith.constant 0 : i32
    %c0_i32_1 = arith.constant 0 : i32
    return %c0_i32, %c0_i32_0 : i32, i32
  }
  func.func @transform_6(%arg0: i32) -> (i32, i32) {
    %c0_i32 = arith.constant 0 : i32
    %c0_i32_0 = arith.constant 0 : i32
    %c0_i32_1 = arith.constant 0 : i32
    return %c0_i32, %c0_i32_0 : i32, i32
  }
  func.func @transform_7(%arg0: i32) -> (i32, i32) {
    %c0_i32 = arith.constant 0 : i32
    %c0_i32_0 = arith.constant 0 : i32
    %c0_i32_1 = arith.constant 0 : i32
    return %c0_i32, %c0_i32_0 : i32, i32
  }
  func.func @transform_8(%arg0: i32) -> (i32, i32) {
    %c0_i32 = arith.constant 0 : i32
    %c0_i32_0 = arith.constant 0 : i32
    %c0_i32_1 = arith.constant 0 : i32
    return %c0_i32, %c0_i32_0 : i32, i32
  }
  func.func @transform_9(%arg0: i32) -> (i32, i32) {
    %c0_i32 = arith.constant 0 : i32
    %c0_i32_0 = arith.constant 0 : i32
    %c0_i32_1 = arith.constant 0 : i32
    return %c0_i32, %c0_i32_0 : i32, i32
  }
  func.func @transform_10(%arg0: i32) -> (i32, i32) {
    %c0_i32 = arith.constant 0 : i32
    %c0_i32_0 = arith.constant 0 : i32
    %c0_i32_1 = arith.constant 0 : i32
    return %c0_i32, %c0_i32_0 : i32, i32
  }
  func.func @transform_11(%arg0: i32) -> (i32, i32) {
    %c0_i32 = arith.constant 0 : i32
    %c0_i32_0 = arith.constant 0 : i32
    %c0_i32_1 = arith.constant 0 : i32
    return %c0_i32, %c0_i32_0 : i32, i32
  }
  func.func @transform_12(%arg0: i32) -> (i32, i32) {
    %c0_i32 = arith.constant 0 : i32
    %c0_i32_0 = arith.constant 0 : i32
    %c0_i32_1 = arith.constant 0 : i32
    return %c0_i32, %c0_i32_0 : i32, i32
  }
  func.func @transform_13(%arg0: i32) -> (i32, i32) {
    %c0_i32 = arith.constant 0 : i32
    %c0_i32_0 = arith.constant 0 : i32
    %c0_i32_1 = arith.constant 0 : i32
    return %c0_i32, %c0_i32_0 : i32, i32
  }
}

</mosaic_0001>

<bundles_post_ra>
// kernel: seq2seq_forward.2
= control target key start
LH: loop header
LB: loop body
LE: loop exit
PB: predicated region body
PF: predicated region fallthrough
CT: control target
= control target key end

     0   :  { %12 = vsyncpa [#allocation3], 0  ;;  %s1172_s21 = smov 0   ;;  %s1368_s0 = inlined_call_operand.vmem [shape: bf16[8,8,128], index: 0, kind: input, shape index: {}]   ;;  %s1369_s1 = inlined_call_operand.vmem [shape: bf16[128,384], index: 1, kind: input, shape index: {}]   ;;  %s1370_s2 = inlined_call_operand.hbm [shape: bf16[128,384], index: 2, kind: input, shape index: {}]   ;;  %s1371_s3 = inlined_call_operand.vmem [shape: f32[1,384], index: 3, kind: input, shape index: {}]   ;;  %s1372_s4 = inlined_call_operand.vmem [shape: f32[1,384], index: 4, kind: input, shape index: {}]   ;;  %s1373_s5 = inlined_call_operand.vmem [shape: bf16[8,8,128], index: 5, kind: output, shape index: {0}]   ;;  %s1374_s6 = inlined_call_operand.vmem [shape: f32[8,128], index: 6, kind: output, shape index: {1}]  }
   0x1 LB: > { %s194_s24 = sshll.u32 %s1370_s2, 4  ;;  %s805_s25 = sadd.s32 4294967295, %s1131_s21   ;;  %s1131_s21 = sphi %s1172_s21, %s18_s21   ;;  %s195_s24 = int_to_ptr.hbm [resolvable:$true] %s194_s24 }
   0x2   : > { %p807_p0 = scmp.ge.s32.totalorder %s1131_s21, 1  ;;  %p180_p1 = scmp.lt.s32.totalorder %s1131_s21, 9 }
   0x3   : > { %p808_p2 = scmp.ne.s32.totalorder %s805_s25, 0  ;;  %p1067_p3 = scmp.eq.s32.totalorder %s805_s25, 0 }
   0x4   : > { %p181_p4 = pnand %p807_p0, %p180_p1  ;;  %s1133_s26 = smov [#allocation2]  }
   0x5   : > { %s196_s27 = sshll.u32 %s1133_s26, 4  ;;  %s1134_s28 = smov 192   ;;  %s197_s27 = int_to_ptr.vmem [resolvable:$true] %s196_s27 }
   0x6   : > { %p1063_p5 = pneg %p181_p4  ;;  %s1135_s29 = smov 12  }
   0x7   : > { %225 = sbr.rel (%p181_p4) target bundleno = 254 (0xfe), region = 40 }
   0x8   : > { %p1064_p6 = pnand %p1067_p3, %p1063_p5 }
   0xa   : > { %1066 = dma.hbm_to_vmem [thread:$0]  (!%p1064_p6), %s195_s24, 3072, %s197_s27, [#allocation3], %s1134_s28, %s1134_s28, %s1135_s29  }
   0xc   : > { %1126 = dma.done.wait (%p1067_p3), [#allocation3], 3072  }
   0xd   : > { %1128 = vsyncadd (%p1067_p3), [#allocation3], 4294964224  ;;  %p254_p7 = scmp.lt.s32.totalorder %s805_s25, 7 }
   0xe   : > { %265 = sbr.rel (%p808_p2) target bundleno = 21 (0x15), region = 48 }
   0xf   : > { %s255_s30 = scalar_select %p254_p7, %s805_s25, 7 }
  0x11   : > { %s812_s7 = sshll.u32 %s255_s30, 2 }
  0x12   : > { %s1186_s10 = scalar_lea.vmem %s1368_s0, %s812_s7  ;;  %s1191_s13 = scalar_lea.vmem %s1373_s5, %s812_s7 }
  0x13   : > { %v1136_v0 = vmov 0.0  }
  0x14   : > { %266 = vst [vmem:[%s1374_s6] sm:$0xff] %v1136_v0 }
  0x15 PF: > { %v901_v1 = vld [vmem:[%s1369_s1 + $0xa8] sm:$0xf]  ;;  %v1033_v2 = vld [vmem:[%s1369_s1 + $0xb0] sm:$0xf0]  ;;  %v889_v6 = vld [vmem:[%s1369_s1 + $0x90] sm:$0xf] }
  0x16   : > { %v997_v3 = vld [vmem:[#allocation2 + $0xa8] sm:$0xf]  ;;  %v902_v4 = vor.u32 %v1033_v2, %v901_v1  ;;  %v1057_v5 = vld [vmem:[#allocation2 + $0xb0] sm:$0xf0]  ;;  %v1030_v7 = vld [vmem:[%s1369_s1 + $0x98] sm:$0xf0] }
  0x17   : > { %v998_v8 = vor.u32 %v1057_v5, %v997_v3  ;;  %v985_v9 = vld [vmem:[#allocation2 + $0x90] sm:$0xf]  ;;  %v1054_v10 = vld [vmem:[#allocation2 + $0x98] sm:$0xf0]  ;;  %v1032_v11 = vld [vmem:[%s1369_s1 + $0xac] sm:$0xf]  ;;  %v890_v12 = vor.u32 %v1030_v7, %v889_v6 }
  0x18   : > { %437 = vmatpush.bf16.msra.mxu0 %v902_v4  ;;  %v903_v13 = vld [vmem:[%s1369_s1 + $0xb4] sm:$0xf0]  ;;  %v986_v14 = vor.u32 %v1054_v10, %v985_v9  ;;  %v1027_v17 = vld [vmem:[%s1369_s1 + $0x80] sm:$0xf0]  ;;  %v1029_v18 = vld [vmem:[%s1369_s1 + $0x94] sm:$0xf] }
  0x19   : > { %645 = vmatpush.bf16.msra.mxu3 %v998_v8  ;;  %v906_v15 = vor.u32 %v1032_v11, %v903_v13  ;;  %v877_v16 = vld [vmem:[%s1369_s1 + $0x78] sm:$0xf]  ;;  %v1051_v20 = vld [vmem:[#allocation2 + $0x80] sm:$0xf0]  ;;  %v891_v21 = vld [vmem:[%s1369_s1 + $0x9c] sm:$0xf0] }
  0x1a   : > { %v973_v19 = vld [vmem:[#allocation2 + $0x78] sm:$0xf]  ;;  %v894_v22 = vor.u32 %v1029_v18, %v891_v21  ;;  %v878_v23 = vor.u32 %v1027_v17, %v877_v16  ;;  %v1026_v24 = vld [vmem:[%s1369_s1 + $0x7c] sm:$0xf]  ;;  %v879_v25 = vld [vmem:[%s1369_s1 + $0x84] sm:$0xf0] }
  0x1b   : > { %450 = vmatpush.bf16.msra.mxu1 %v906_v15  ;;  %v974_v26 = vor.u32 %v1051_v20, %v973_v19  ;;  %v865_v27 = vld [vmem:[%s1369_s1 + $0x60] sm:$0xf]  ;;  %v1024_v28 = vld [vmem:[%s1369_s1 + $0x68] sm:$0xf0]  ;;  %v882_v31 = vor.u32 %v1026_v24, %v879_v25  ;;  %v1023_v33 = vld [vmem:[%s1369_s1 + $0x64] sm:$0xf] }
  0x1c   : > { %438 = vmatpush.bf16.msra.mxu0 %v890_v12  ;;  %v961_v29 = vld [vmem:[#allocation2 + $0x60] sm:$0xf]  ;;  %v1048_v30 = vld [vmem:[#allocation2 + $0x68] sm:$0xf0]  ;;  %v866_v32 = vor.u32 %v1024_v28, %v865_v27  ;;  %v867_v34 = vld [vmem:[%s1369_s1 + $0x6c] sm:$0xf0] }
  0x1d   : > { %646 = vmatpush.bf16.msra.mxu3 %v986_v14  ;;  %v962_v35 = vor.u32 %v1048_v30, %v961_v29  ;;  %v853_v36 = vld [vmem:[%s1369_s1 + $0x48] sm:$0xf]  ;;  %v1021_v37 = vld [vmem:[%s1369_s1 + $0x50] sm:$0xf0]  ;;  %v870_v40 = vor.u32 %v1023_v33, %v867_v34  ;;  %v841_v42 = vld [vmem:[%s1369_s1 + $0x30] sm:$0xf] }
  0x1e   : > { %v949_v38 = vld [vmem:[#allocation2 + $0x48] sm:$0xf]  ;;  %v1045_v39 = vld [vmem:[#allocation2 + $0x50] sm:$0xf0]  ;;  %v854_v41 = vor.u32 %v1021_v37, %v853_v36  ;;  %v1020_v43 = vld [vmem:[%s1369_s1 + $0x4c] sm:$0xf] }
  0x1f   : > { %451 = vmatpush.bf16.msra.mxu1 %v894_v22  ;;  %v855_v44 = vld [vmem:[%s1369_s1 + $0x54] sm:$0xf0]  ;;  %v950_v45 = vor.u32 %v1045_v39, %v949_v38  ;;  %v1018_v46 = vld [vmem:[%s1369_s1 + $0x38] sm:$0xf0]  ;;  %v909_v47 = vld [vmem:[%s1369_s1 + $0xb0] sm:$0xf] }
  0x20   : > { %439 = vmatpush.bf16.msra.mxu0 %v878_v23  ;;  %v1034_v48 = vld [vmem:[%s1369_s1 + $0xb8] sm:$0xf0]  ;;  %v937_v49 = vld [vmem:[#allocation2 + $0x30] sm:$0xf]  ;;  %v858_v52 = vor.u32 %v1020_v43, %v855_v44  ;;  %v897_v53 = vld [vmem:[%s1369_s1 + $0x98] sm:$0xf]  ;;  %v842_v54 = vor.u32 %v1018_v46, %v841_v42 }
  0x21   : > { %647 = vmatpush.bf16.msra.mxu3 %v974_v26  ;;  %v1042_v50 = vld [vmem:[#allocation2 + $0x38] sm:$0xf0]  ;;  %v910_v51 = vor.u32 %v1034_v48, %v909_v47  ;;  %v1017_v55 = vld [vmem:[%s1369_s1 + $0x34] sm:$0xf]  ;;  %v843_v56 = vld [vmem:[%s1369_s1 + $0x3c] sm:$0xf0] }
  0x22   : > { %v1031_v57 = vld [vmem:[%s1369_s1 + $0xa0] sm:$0xf0]  ;;  %v938_v58 = vor.u32 %v1042_v50, %v937_v49  ;;  %v829_v59 = vld [vmem:[%s1369_s1 + $0x18] sm:$0xf]  ;;  %v885_v62 = vld [vmem:[%s1369_s1 + $0x80] sm:$0xf]  ;;  %v846_v2 = vor.u32 %v1017_v55, %v843_v56 }
  0x23   : > { %452 = vmatpush.bf16.msra.mxu1 %v882_v31  ;;  %463 = vmatpush.bf16.msra.mxu2 %v910_v51  ;;  %v1015_v60 = vld [vmem:[%s1369_s1 + $0x20] sm:$0xf0]  ;;  %v898_v61 = vor.u32 %v1031_v57, %v897_v53  ;;  %v925_v63 = vld [vmem:[#allocation2 + $0x18] sm:$0xf]  ;;  %v1028_v1 = vld [vmem:[%s1369_s1 + $0x88] sm:$0xf0] }
  0x24   : > { %440 = vmatpush.bf16.msra.mxu0 %v866_v32  ;;  %v1039_v0 = vld [vmem:[#allocation2 + $0x20] sm:$0xf0]  ;;  %v817_v3 = vld [vmem:[%s1369_s1] sm:$0xf]  ;;  %v830_v4 = vor.u32 %v1015_v60, %v829_v59  ;;  %v1012_v5 = vld [vmem:[%s1369_s1 + $0x8] sm:$0xf0]  ;;  %v886_v8 = vor.u32 %v1028_v1, %v885_v62 }
  0x25   : > { %648 = vmatpush.bf16.msra.mxu3 %v962_v35  ;;  %v1014_v6 = vld [vmem:[%s1369_s1 + $0x1c] sm:$0xf]  ;;  %v831_v7 = vld [vmem:[%s1369_s1 + $0x24] sm:$0xf0]  ;;  %v926_v9 = vor.u32 %v1039_v0, %v925_v63  ;;  %v913_v10 = vld [vmem:[#allocation2] sm:$0xf]  ;;  %v818_v17 = vor.u32 %v1012_v5, %v817_v3 }
  0x26   : > { %v873_v11 = vld [vmem:[%s1369_s1 + $0x68] sm:$0xf]  ;;  %v1025_v12 = vld [vmem:[%s1369_s1 + $0x70] sm:$0xf0]  ;;  %v1036_v13 = vld [vmem:[#allocation2 + $0x8] sm:$0xf0]  ;;  %v834_v16 = vor.u32 %v1014_v6, %v831_v7 }
  0x27   : > { %453 = vmatpush.bf16.msra.mxu1 %v870_v40  ;;  %464 = vmatpush.bf16.msra.mxu2 %v898_v61  ;;  %v1056_v14 = vld [vmem:[#allocation2 + $0xac] sm:$0xf]  ;;  %v999_v15 = vld [vmem:[#allocation2 + $0xb4] sm:$0xf0]  ;;  %v1314_v18 = vld [vmem:[%s1374_s6] sm:$0xff]  ;;  %v874_v21 = vor.u32 %v1025_v12, %v873_v11  ;;  %v914_v22 = vor.u32 %v1036_v13, %v913_v10 }
  0x28   : > { %441 = vmatpush.bf16.msra.mxu0 %v854_v41  ;;  %v1011_v19 = vld [vmem:[%s1369_s1 + $0x4] sm:$0xf]  ;;  %v819_v20 = vld [vmem:[%s1369_s1 + $0xc] sm:$0xf0]  ;;  %v1002_v23 = vor.u32 %v1056_v14, %v999_v15  ;;  %v1053_v24 = vld [vmem:[#allocation2 + $0x94] sm:$0xf]  ;;  %v1330_v31 = vpack.c.bf16 %v1314_v18, %v1314_v18 }
  0x29   : > { %649 = vmatpush.bf16.msra.mxu3 %v950_v45  ;;  %v1005_v25 = vld [vmem:[#allocation2 + $0xb0] sm:$0xf]  ;;  %v1058_v26 = vld [vmem:[#allocation2 + $0xb8] sm:$0xf0]  ;;  %v987_v27 = vld [vmem:[#allocation2 + $0x9c] sm:$0xf0]  ;;  %v822_v30 = vor.u32 %v1011_v19, %v819_v20 }
  0x2a   : > { %v861_v28 = vld [vmem:[%s1369_s1 + $0x50] sm:$0xf]  ;;  %v1022_v29 = vld [vmem:[%s1369_s1 + $0x58] sm:$0xf0]  ;;  %v267_v32 = vld [vmem:[%s1186_s10] sm:$0xf]  ;;  %v1006_v33 = vor.u32 %v1058_v26, %v1005_v25  ;;  %v990_v34 = vor.u32 %v1053_v24, %v987_v27 }
  0x2b   : > { %454 = vmatpush.bf16.msra.mxu1 %v858_v52  ;;  %465 = vmatpush.bf16.msra.mxu2 %v886_v8  ;;  %v1050_v35 = vld [vmem:[#allocation2 + $0x7c] sm:$0xf]  ;;  %v993_v36 = vld [vmem:[#allocation2 + $0x98] sm:$0xf]  ;;  %v1055_v37 = vld [vmem:[#allocation2 + $0xa0] sm:$0xf0]  ;;  %v862_v38 = vor.u32 %v1022_v29, %v861_v28 }
  0x2c   : > { %442 = vmatpush.bf16.msra.mxu0 %v842_v54  ;;  %v975_v39 = vld [vmem:[#allocation2 + $0x84] sm:$0xf0]  ;;  %v849_v40 = vld [vmem:[%s1369_s1 + $0x38] sm:$0xf]  ;;  %v1019_v41 = vld [vmem:[%s1369_s1 + $0x40] sm:$0xf0]  ;;  %v994_v42 = vor.u32 %v1055_v37, %v993_v36 }
  0x2d   : > { %650 = vmatpush.bf16.msra.mxu3 %v938_v58  ;;  %v978_v43 = vor.u32 %v1050_v35, %v975_v39  ;;  %v1047_v44 = vld [vmem:[#allocation2 + $0x64] sm:$0xf]  ;;  %v981_v45 = vld [vmem:[#allocation2 + $0x80] sm:$0xf]  ;;  %v1052_v46 = vld [vmem:[#allocation2 + $0x88] sm:$0xf0]  ;;  %v850_v47 = vor.u32 %v1019_v41, %v849_v40 }
  0x2e   : > { %v963_v48 = vld [vmem:[#allocation2 + $0x6c] sm:$0xf0]  ;;  %v837_v49 = vld [vmem:[%s1369_s1 + $0x20] sm:$0xf]  ;;  %v1016_v50 = vld [vmem:[%s1369_s1 + $0x28] sm:$0xf0]  ;;  %v982_v51 = vor.u32 %v1052_v46, %v981_v45 }
  0x2f   : > { %455 = vmatpush.bf16.msra.mxu1 %v846_v2  ;;  %466 = vmatpush.bf16.msra.mxu2 %v874_v21  ;;  %v966_v52 = vor.u32 %v1047_v44, %v963_v48  ;;  %v1044_v53 = vld [vmem:[#allocation2 + $0x4c] sm:$0xf]  ;;  %v969_v54 = vld [vmem:[#allocation2 + $0x68] sm:$0xf]  ;;  %v1049_v55 = vld [vmem:[#allocation2 + $0x70] sm:$0xf0]  ;;  %v838_v56 = vor.u32 %v1016_v50, %v837_v49 }
  0x30   : > { %443 = vmatpush.bf16.msra.mxu0 %v830_v4  ;;  %v951_v57 = vld [vmem:[#allocation2 + $0x54] sm:$0xf0]  ;;  %v825_v58 = vld [vmem:[%s1369_s1 + $0x8] sm:$0xf]  ;;  %v1013_v59 = vld [vmem:[%s1369_s1 + $0x10] sm:$0xf0]  ;;  %v970_v60 = vor.u32 %v1049_v55, %v969_v54 }
  0x31   : > { %651 = vmatpush.bf16.msra.mxu3 %v926_v9  ;;  %v954_v61 = vor.u32 %v1044_v53, %v951_v57  ;;  %v957_v62 = vld [vmem:[#allocation2 + $0x50] sm:$0xf]  ;;  %v1046_v63 = vld [vmem:[#allocation2 + $0x58] sm:$0xf0]  ;;  %v826_v0 = vor.u32 %v1013_v59, %v825_v58  ;;  %v1041_v1 = vld [vmem:[#allocation2 + $0x34] sm:$0xf] }
  0x32   : > { %v939_v2 = vld [vmem:[#allocation2 + $0x3c] sm:$0xf0]  ;;  %v958_v3 = vor.u32 %v1046_v63, %v957_v62  ;;  %v945_v5 = vld [vmem:[#allocation2 + $0x38] sm:$0xf]  ;;  %v1043_v6 = vld [vmem:[#allocation2 + $0x40] sm:$0xf0] }
  0x33   : > { %456 = vmatpush.bf16.msra.mxu1 %v834_v16  ;;  %467 = vmatpush.bf16.msra.mxu2 %v862_v38  ;;  %v942_v4 = vor.u32 %v1041_v1, %v939_v2  ;;  %v1038_v7 = vld [vmem:[#allocation2 + $0x1c] sm:$0xf]  ;;  %v927_v8 = vld [vmem:[#allocation2 + $0x24] sm:$0xf0]  ;;  %v946_v9 = vor.u32 %v1043_v6, %v945_v5  ;;  %v933_v11 = vld [vmem:[#allocation2 + $0x20] sm:$0xf] }
  0x34   : > { %444 = vmatpush.bf16.msra.mxu0 %v818_v17  ;;  %v930_v10 = vor.u32 %v1038_v7, %v927_v8  ;;  %v1040_v12 = vld [vmem:[#allocation2 + $0x28] sm:$0xf0]  ;;  %v1035_v13 = vld [vmem:[#allocation2 + $0x4] sm:$0xf]  ;;  %v915_v14 = vld [vmem:[#allocation2 + $0xc] sm:$0xf0] }
  0x35   : > { %652 = vmatpush.bf16.msra.mxu3 %v914_v22  ;;  %v934_v15 = vor.u32 %v1040_v12, %v933_v11  ;;  %v918_v16 = vor.u32 %v1035_v13, %v915_v14  ;;  %v921_v17 = vld [vmem:[#allocation2 + $0x8] sm:$0xf]  ;;  %v1037_v19 = vld [vmem:[#allocation2 + $0x10] sm:$0xf0]  ;;  %v301_v21 = vld [vmem:[%s1371_s3] sm:$0x7] }
  0x36   : > { %v922_v20 = vor.u32 %v1037_v19, %v921_v17  ;;  %v303_v24 = vperm.slane %v301_v21, 0  ;;  %v304_v38 = vperm.slane %v301_v21, 1  ;;  %v305_v62 = vperm.slane %v301_v21, 2 }
  0x37   : > { %457 = vmatpush.bf16.msra.mxu1 %v822_v30  ;;  %445 = vmatmul.bf16.vlgmr.msra.gmra.mxu0 %v267_v32 }
  0x38   : > { %658 = vmatpush.bf16.msrb.mxu0 %v1002_v23  ;;  %653 = vmatmul.bf16.vlgmr.msra.gmra.mxu3 %v1330_v31  ;;  %v509_v23 = vld [vmem:[%s1372_s4] sm:$0x7] }
  0x39   : > { %468 = vmatpush.bf16.msra.mxu2 %v850_v47  ;;  %v511_v26 = vperm.slane %v509_v23, 0  ;;  %v512_v39 = vperm.slane %v509_v23, 1  ;;  %v513_v55 = vperm.slane %v509_v23, 2 }
  0x3a   : > { %458 = vmatmul.bf16.vlgmr.msra.gmra.mxu1 %v267_v32 }
  0x3b   : > { %671 = vmatpush.bf16.msrb.mxu1 %v1006_v33 }
  0x3c   : > { %659 = vmatpush.bf16.msrb.mxu0 %v990_v34 }
  0x3d   : > { %469 = vmatpush.bf16.msra.mxu2 %v838_v56 }
  0x3f   : > { %672 = vmatpush.bf16.msrb.mxu1 %v994_v42 }
  0x40   : > { %660 = vmatpush.bf16.msrb.mxu0 %v978_v43 }
  0x41   : > { %470 = vmatpush.bf16.msra.mxu2 %v826_v0 }
  0x43   : > { %673 = vmatpush.bf16.msrb.mxu1 %v982_v51 }
  0x44   : > { %661 = vmatpush.bf16.msrb.mxu0 %v966_v52  ;;  %471 = vmatmul.bf16.vlgmr.msra.gmra.mxu2 %v267_v32 }
  0x47   : > { %674 = vmatpush.bf16.msrb.mxu1 %v970_v60 }
  0x48   : > { %662 = vmatpush.bf16.msrb.mxu0 %v954_v61 }
  0x4b   : > { %675 = vmatpush.bf16.msrb.mxu1 %v958_v3 }
  0x4c   : > { %663 = vmatpush.bf16.msrb.mxu0 %v942_v4 }
  0x4f   : > { %676 = vmatpush.bf16.msrb.mxu1 %v946_v9 }
  0x50   : > { %664 = vmatpush.bf16.msrb.mxu0 %v930_v10 }
  0x53   : > { %677 = vmatpush.bf16.msrb.mxu1 %v934_v15 }
  0x54   : > { %665 = vmatpush.bf16.msrb.mxu0 %v918_v16 }
  0x57   : > { %666 = vmatmul.bf16.vlgmr.msrb.gmra.mxu0 %v1330_v31  ;;  %678 = vmatpush.bf16.msrb.mxu1 %v922_v20 }
  0x5a   : > { %679 = vmatmul.bf16.vlgmr.msrb.gmra.mxu1 %v1330_v31 }
  0xb4   : > { %v446_v22 = vpop.f32.mrf.mxu0 }
  0xb5   : > { %v447_v27 = vadd.f32 %v446_v22, %v303_v24 }
  0xb7   : > { %v459_v25 = vpop.f32.mrf.mxu1 }
  0xb8   : > { %v460_v40 = vadd.f32 %v459_v25, %v304_v38 }
  0xbb   : > { %v654_v28 = vpop.f32.mrf.mxu3 }
  0xbc   : > { %v655_v29 = vadd.f32 %v654_v28, %v511_v26  ;;  %v448_v30 = vpop.f32.mrf.mxu0 }
  0xbe   : > { %v684_v32 = vadd.f32 %v655_v29, %v447_v27 }
  0xbf   : > { %v461_v33 = vpop.f32.mrf.mxu1 }
  0xc0   : > { %v1007_v34 = vmul.f32 -1.442695, %v684_v32 }
  0xc2   : > { %1081 = vpow2.f32 %v1007_v34 }
  0xc3   : > { %v656_v31 = vpop.f32.mrf.mxu3 }
  0xc7   : > { %v472_v37 = vpop.f32.mrf.mxu2 }
  0xc8   : > { %v1082_v35 = vpop.eup %1081  ;;  %v473_v1 = vadd.f32 %v472_v37, %v305_v62 }
  0xc9   : > { %v688_v36 = vadd.f32 1.0, %v1082_v35 }
  0xcb   : > { %1083 = vrcp.f32 %v688_v36  ;;  %vm694_vm0 = vweird.f32 %v688_v36  ;;  %v700_v53 = vand.u32 2147483648, %v688_v36  ;;  %v698_v56 = vand.u32 2147483647, %v688_v36 }
  0xcd   : > { %v701_v60 = vor.u32 1.1754944e-38, %v700_v53  ;;  %vm699_vm3 = vcmp.eq.f32.partialorder %v698_v56, 8.507059e+37 }
  0xcf   : > { %v474_v45 = vpop.f32.mrf.mxu2 }
  0xd1   : > { %v1084_v41 = vpop.eup %1083 }
  0xd2   : > { %v690_v44 = vmul.f32 %v1084_v41, %v688_v36  ;;  %vm695_vm1 = vweird.f32 %v1084_v41 }
  0xd3   : > { %vm696_vm2 = vmor %vm694_vm0, %vm695_vm1 }
  0xd4   : > { %v667_v42 = vpop.f32.mrf.mxu0  ;;  %v691_v48 = vsub.f32 1.0, %v690_v44 }
  0xd5   : > { %v668_v43 = vadd.f32 %v667_v42, %v512_v39 }
  0xd6   : > { %v692_v50 = vmul.f32 %v1084_v41, %v691_v48 }
  0xd7   : > { %v704_v46 = vadd.f32 %v668_v43, %v460_v40  ;;  %v680_v47 = vpop.f32.mrf.mxu1 }
  0xd8   : > { %v693_v52 = vadd.f32 %v1084_v41, %v692_v50  ;;  %v681_v61 = vadd.f32 %v680_v47, %v513_v55 }
  0xd9   : > { %v1008_v49 = vmul.f32 -1.442695, %v704_v46 }
  0xda   : > { %v697_v59 = vsel %vm696_vm2, %v1084_v41, %v693_v52 }
  0xdb   : > { %1085 = vpow2.f32 %v1008_v49  ;;  %v702_v63 = vsel %vm699_vm3, %v701_v60, %v697_v59 }
  0xdc   : > { %v669_v51 = vpop.f32.mrf.mxu0  ;;  %v724_v0 = vmul.f32 %v702_v63, %v681_v61 }
  0xde   : > { %v725_v4 = vadd.f32 %v724_v0, %v473_v1 }
  0xdf   : > { %v682_v54 = vpop.f32.mrf.mxu1 }
  0xe1   : > { %v1086_v57 = vpop.eup %1085 }
  0xe2   : > { %v708_v58 = vadd.f32 1.0, %v1086_v57 }
  0xe4   : > { %1087 = vrcp.f32 %v708_v58  ;;  %v720_v6 = vand.u32 2147483648, %v708_v58  ;;  %v718_v8 = vand.u32 2147483647, %v708_v58  ;;  %vm714_vm5 = vweird.f32 %v708_v58 }
  0xe5   : > { %1089 = vtanh.f32 %v725_v4 }
  0xe6   : > { %v721_v10 = vor.u32 1.1754944e-38, %v720_v6  ;;  %vm719_vm7 = vcmp.eq.f32.partialorder %v718_v8, 8.507059e+37 }
  0xea   : > { %v1088_v2 = vpop.eup %1087 }
  0xeb   : > { %v710_v3 = vmul.f32 %v1088_v2, %v708_v58  ;;  %vm715_vm4 = vweird.f32 %v1088_v2  ;;  %v1090_v14 = vpop.eup %1089 }
  0xec   : > { %vm716_vm6 = vmor %vm714_vm5, %vm715_vm4 }
  0xed   : > { %v711_v5 = vsub.f32 1.0, %v710_v3 }
  0xef   : > { %v712_v7 = vmul.f32 %v1088_v2, %v711_v5 }
  0xf1   : > { %v713_v9 = vadd.f32 %v1088_v2, %v712_v7 }
  0xf3   : > { %v717_v11 = vsel %vm716_vm6, %v1088_v2, %v713_v9 }
  0xf4   : > { %v722_v12 = vsel %vm719_vm7, %v721_v10, %v717_v11 }
  0xf5   : > { %v727_v13 = vsub.f32 1.0, %v722_v12  ;;  %v729_v16 = vmul.f32 %v722_v12, %v1314_v18 }
  0xf7   : > { %v728_v15 = vmul.f32 %v1090_v14, %v727_v13 }
  0xf9   : > { %v730_v17 = vadd.f32 %v729_v16, %v728_v15 }
  0xfb   : > { %731 = vst [vmem:[%s1374_s6] sm:$0xff] %v730_v17  ;;  %v732_v19 = vpack.c.bf16 %v730_v17, %v730_v17 }
  0xfd   : > { %733 = vst [vmem:[%s1191_s13] sm:$0xf] %v732_v19 }
  0xfe PF: > { %s18_s21 = sadd.s32 1, %s1131_s21  }
  0xff   : > { %p15_p8 = scmp.ge.s32.totalorder %s18_s21, 10  }
 0x101   :  { %17 = sbr.rel (!%p15_p8) target bundleno = 1 (0x1), region = 87 }
 0x106   :  { %759 = vsyncpa [#allocation3], 1 }
 0x107   :  { %761 = vsyncpa [#allocation3 + $0x1], 1 }

// kernel: seq2seq_forward.3
= control target key start
LH: loop header
LB: loop body
LE: loop exit
PB: predicated region body
PF: predicated region fallthrough
CT: control target
= control target key end

     0   :  { %18 = vsyncpa [#allocation4], 0  ;;  %s2275_s25 = smov 0   ;;  %s2824_s0 = inlined_call_operand.vmem [shape: bf16[7,8,128], index: 0, kind: input, shape index: {}]   ;;  %s2825_s1 = inlined_call_operand.vmem [shape: s32[7,8,1], index: 1, kind: input, shape index: {}]   ;;  %s2826_s2 = inlined_call_operand.vmem [shape: f32[8,128], index: 2, kind: input, shape index: {}]   ;;  %s2827_s3 = inlined_call_operand.vmem [shape: bf16[8,8,128], index: 3, kind: input, shape index: {}]   ;;  %s2828_s4 = inlined_call_operand.vmem [shape: f32[8,384], index: 4, kind: input, shape index: {}]   ;;  %s2829_s5 = inlined_call_operand.vmem [shape: bf16[128,384], index: 5, kind: input, shape index: {}]   ;;  %s2830_s6 = inlined_call_operand.vmem [shape: bf16[128,384], index: 6, kind: input, shape index: {}]   ;;  %s2831_s7 = inlined_call_operand.vmem [shape: f32[1,384], index: 7, kind: input, shape index: {}]   ;;  %s2832_s8 = inlined_call_operand.vmem [shape: bf16[128,128], index: 8, kind: input, shape index: {}]   ;;  %s2833_s9 = inlined_call_operand.vmem [shape: bf16[128,128], index: 9, kind: input, shape index: {}]   ;;  %s2834_s10 = inlined_call_operand.vmem [shape: f32[1,128], index: 10, kind: input, shape index: {}]   ;;  %s2835_s11 = inlined_call_operand.vmem [shape: bf16[128,128], index: 11, kind: input, shape index: {}]   ;;  %s2836_s12 = inlined_call_operand.vmem [shape: f32[1,128], index: 12, kind: input, shape index: {}]   ;;  %s2837_s13 = inlined_call_operand.hbm [shape: f32[1,1], index: 13, kind: output, shape index: {}]  }
   0x1 LB: > { %s2281_s26 = sadd.s32 4294967295, %s2199_s25   ;;  %p1709_p0 = scmp.ge.s32.totalorder %s2199_s25, 1  ;;  %s2199_s25 = sphi %s2275_s25, %s24_s25  }
   0x2   : > { %p391_p1 = scmp.lt.s32.totalorder %s2199_s25, 8 }
   0x4   : > { %p392_p2 = pnand %p1709_p0, %p391_p1 }
   0x5   : > { %p433_p3 = scmp.lt.s32.totalorder (!%p392_p2), %s2281_s26, 6  ;;  %p1712_p4 = scmp.ne.s32.totalorder (!%p392_p2), %s2281_s26, 0 }
   0x6   : > { %395 = sbr.rel (%p392_p2) target bundleno = 1507 (0x5e3), region = 72 }
   0xb   : > { %s434_s27 = scalar_select %p433_p3, %s2281_s26, 6 }
   0xc   : > { %445 = sbr.rel (%p1712_p4) target bundleno = 20 (0x14), region = 76 }
   0xd   : > { %s1710_s28 = sshll.u32 %s434_s27, 2  ;;  %s1711_s29 = sshll.u32 %s434_s27, 3 }
   0xe   : > { %s2290_s15 = scalar_lea.vmem %s2824_s0, %s1710_s28  ;;  %s2295_s18 = scalar_lea.vmem %s2825_s1, %s1711_s29 }
  0x11   : > { %v446_v0 = vld [vmem:[%s2826_s2] sm:$0xff]  ;;  %vm448_vm0 = vcmask 0   ;;  %v2201_v1 = vmov 0.0  }
  0x12   : > { %447 = vst [vmem:[#allocation2] sm:$0xff] %v446_v0 }
  0x13   : > { %449 = vst.msk [vmem:[#allocation3] sm:$0x1] %vm448_vm0, %v2201_v1 }
  0x14 PF: > { %v1799_v2 = vld [vmem:[%s2829_s5 + $0xa8] sm:$0xf]  ;;  %v2042_v3 = vld [vmem:[%s2829_s5 + $0xb0] sm:$0xf0]  ;;  %v1787_v7 = vld [vmem:[%s2829_s5 + $0x90] sm:$0xf] }
  0x15   : > { %v1895_v4 = vld [vmem:[%s2830_s6 + $0xa8] sm:$0xf]  ;;  %v1800_v5 = vor.u32 %v2042_v3, %v1799_v2  ;;  %v2066_v6 = vld [vmem:[%s2830_s6 + $0xb0] sm:$0xf0]  ;;  %v2039_v8 = vld [vmem:[%s2829_s5 + $0x98] sm:$0xf0] }
  0x16   : > { %v1896_v9 = vor.u32 %v2066_v6, %v1895_v4  ;;  %v1883_v10 = vld [vmem:[%s2830_s6 + $0x90] sm:$0xf]  ;;  %v2063_v11 = vld [vmem:[%s2830_s6 + $0x98] sm:$0xf0]  ;;  %v2041_v12 = vld [vmem:[%s2829_s5 + $0xac] sm:$0xf]  ;;  %v1788_v13 = vor.u32 %v2039_v8, %v1787_v7 }
  0x17   : > { %615 = vmatpush.bf16.msra.mxu0 %v1800_v5  ;;  %v1801_v14 = vld [vmem:[%s2829_s5 + $0xb4] sm:$0xf0]  ;;  %v1884_v15 = vor.u32 %v2063_v11, %v1883_v10  ;;  %v2036_v18 = vld [vmem:[%s2829_s5 + $0x80] sm:$0xf0]  ;;  %v2038_v19 = vld [vmem:[%s2829_s5 + $0x94] sm:$0xf] }
  0x18   : > { %823 = vmatpush.bf16.msra.mxu3 %v1896_v9  ;;  %v1804_v16 = vor.u32 %v2041_v12, %v1801_v14  ;;  %v1775_v17 = vld [vmem:[%s2829_s5 + $0x78] sm:$0xf]  ;;  %v2060_v21 = vld [vmem:[%s2830_s6 + $0x80] sm:$0xf0]  ;;  %v1789_v22 = vld [vmem:[%s2829_s5 + $0x9c] sm:$0xf0] }
  0x19   : > { %v1871_v20 = vld [vmem:[%s2830_s6 + $0x78] sm:$0xf]  ;;  %v1792_v23 = vor.u32 %v2038_v19, %v1789_v22  ;;  %v1776_v24 = vor.u32 %v2036_v18, %v1775_v17  ;;  %v2035_v25 = vld [vmem:[%s2829_s5 + $0x7c] sm:$0xf]  ;;  %v1777_v26 = vld [vmem:[%s2829_s5 + $0x84] sm:$0xf0] }
  0x1a   : > { %628 = vmatpush.bf16.msra.mxu1 %v1804_v16  ;;  %v1872_v27 = vor.u32 %v2060_v21, %v1871_v20  ;;  %v1763_v28 = vld [vmem:[%s2829_s5 + $0x60] sm:$0xf]  ;;  %v2033_v29 = vld [vmem:[%s2829_s5 + $0x68] sm:$0xf0]  ;;  %v1780_v32 = vor.u32 %v2035_v25, %v1777_v26  ;;  %v2032_v34 = vld [vmem:[%s2829_s5 + $0x64] sm:$0xf] }
  0x1b   : > { %616 = vmatpush.bf16.msra.mxu0 %v1788_v13  ;;  %v1859_v30 = vld [vmem:[%s2830_s6 + $0x60] sm:$0xf]  ;;  %v2057_v31 = vld [vmem:[%s2830_s6 + $0x68] sm:$0xf0]  ;;  %v1764_v33 = vor.u32 %v2033_v29, %v1763_v28  ;;  %v1765_v35 = vld [vmem:[%s2829_s5 + $0x6c] sm:$0xf0] }
  0x1c   : > { %824 = vmatpush.bf16.msra.mxu3 %v1884_v15  ;;  %v1860_v36 = vor.u32 %v2057_v31, %v1859_v30  ;;  %v1751_v37 = vld [vmem:[%s2829_s5 + $0x48] sm:$0xf]  ;;  %v2030_v38 = vld [vmem:[%s2829_s5 + $0x50] sm:$0xf0]  ;;  %v1768_v41 = vor.u32 %v2032_v34, %v1765_v35  ;;  %v1739_v42 = vld [vmem:[%s2829_s5 + $0x30] sm:$0xf] }
  0x1d   : > { %v1847_v39 = vld [vmem:[%s2830_s6 + $0x48] sm:$0xf]  ;;  %v2054_v40 = vld [vmem:[%s2830_s6 + $0x50] sm:$0xf0]  ;;  %v1752_v43 = vor.u32 %v2030_v38, %v1751_v37  ;;  %v2027_v44 = vld [vmem:[%s2829_s5 + $0x38] sm:$0xf0] }
  0x1e   : > { %629 = vmatpush.bf16.msra.mxu1 %v1792_v23  ;;  %v2029_v45 = vld [vmem:[%s2829_s5 + $0x4c] sm:$0xf]  ;;  %v1753_v46 = vld [vmem:[%s2829_s5 + $0x54] sm:$0xf0]  ;;  %v1848_v47 = vor.u32 %v2054_v40, %v1847_v39  ;;  %v1807_v48 = vld [vmem:[%s2829_s5 + $0xb0] sm:$0xf]  ;;  %v1740_v55 = vor.u32 %v2027_v44, %v1739_v42 }
  0x1f   : > { %617 = vmatpush.bf16.msra.mxu0 %v1776_v24  ;;  %v2043_v49 = vld [vmem:[%s2829_s5 + $0xb8] sm:$0xf0]  ;;  %v1835_v50 = vld [vmem:[%s2830_s6 + $0x30] sm:$0xf]  ;;  %v1756_v53 = vor.u32 %v2029_v45, %v1753_v46  ;;  %v1795_v54 = vld [vmem:[%s2829_s5 + $0x98] sm:$0xf] }
  0x20   : > { %825 = vmatpush.bf16.msra.mxu3 %v1872_v27  ;;  %v2051_v51 = vld [vmem:[%s2830_s6 + $0x38] sm:$0xf0]  ;;  %v1808_v52 = vor.u32 %v2043_v49, %v1807_v48  ;;  %v2026_v56 = vld [vmem:[%s2829_s5 + $0x34] sm:$0xf]  ;;  %v1741_v57 = vld [vmem:[%s2829_s5 + $0x3c] sm:$0xf0] }
  0x21   : > { %v2040_v58 = vld [vmem:[%s2829_s5 + $0xa0] sm:$0xf0]  ;;  %v1836_v59 = vor.u32 %v2051_v51, %v1835_v50  ;;  %v1727_v60 = vld [vmem:[%s2829_s5 + $0x18] sm:$0xf]  ;;  %v1783_v63 = vld [vmem:[%s2829_s5 + $0x80] sm:$0xf]  ;;  %v1744_v3 = vor.u32 %v2026_v56, %v1741_v57 }
  0x22   : > { %630 = vmatpush.bf16.msra.mxu1 %v1780_v32  ;;  %641 = vmatpush.bf16.msra.mxu2 %v1808_v52  ;;  %v2024_v61 = vld [vmem:[%s2829_s5 + $0x20] sm:$0xf0]  ;;  %v1796_v62 = vor.u32 %v2040_v58, %v1795_v54  ;;  %v1823_v0 = vld [vmem:[%s2830_s6 + $0x18] sm:$0xf]  ;;  %v2037_v2 = vld [vmem:[%s2829_s5 + $0x88] sm:$0xf0] }
  0x23   : > { %618 = vmatpush.bf16.msra.mxu0 %v1764_v33  ;;  %v2048_v1 = vld [vmem:[%s2830_s6 + $0x20] sm:$0xf0]  ;;  %v1715_v4 = vld [vmem:[%s2829_s5] sm:$0xf]  ;;  %v1728_v5 = vor.u32 %v2024_v61, %v1727_v60  ;;  %v2021_v6 = vld [vmem:[%s2829_s5 + $0x8] sm:$0xf0]  ;;  %v1784_v9 = vor.u32 %v2037_v2, %v1783_v63 }
  0x24   : > { %826 = vmatpush.bf16.msra.mxu3 %v1860_v36  ;;  %v2023_v7 = vld [vmem:[%s2829_s5 + $0x1c] sm:$0xf]  ;;  %v1729_v8 = vld [vmem:[%s2829_s5 + $0x24] sm:$0xf0]  ;;  %v1824_v10 = vor.u32 %v2048_v1, %v1823_v0  ;;  %v1811_v11 = vld [vmem:[%s2830_s6] sm:$0xf]  ;;  %v1716_v18 = vor.u32 %v2021_v6, %v1715_v4 }
  0x25   : > { %v1771_v12 = vld [vmem:[%s2829_s5 + $0x68] sm:$0xf]  ;;  %v2034_v13 = vld [vmem:[%s2829_s5 + $0x70] sm:$0xf0]  ;;  %v2045_v14 = vld [vmem:[%s2830_s6 + $0x8] sm:$0xf0]  ;;  %v1732_v17 = vor.u32 %v2023_v7, %v1729_v8 }
  0x26   : > { %631 = vmatpush.bf16.msra.mxu1 %v1768_v41  ;;  %642 = vmatpush.bf16.msra.mxu2 %v1796_v62  ;;  %v2065_v15 = vld [vmem:[%s2830_s6 + $0xac] sm:$0xf]  ;;  %v1897_v16 = vld [vmem:[%s2830_s6 + $0xb4] sm:$0xf0]  ;;  %v2469_v19 = vld [vmem:[#allocation2] sm:$0xff]  ;;  %v1772_v22 = vor.u32 %v2034_v13, %v1771_v12  ;;  %v1812_v23 = vor.u32 %v2045_v14, %v1811_v11  ;;  %vm1175_vm1 = vcmask 1043456  }
  0x27   : > { %619 = vmatpush.bf16.msra.mxu0 %v1752_v43  ;;  %v2020_v20 = vld [vmem:[%s2829_s5 + $0x4] sm:$0xf]  ;;  %v1717_v21 = vld [vmem:[%s2829_s5 + $0xc] sm:$0xf0]  ;;  %v1900_v24 = vor.u32 %v2065_v15, %v1897_v16  ;;  %v2062_v25 = vld [vmem:[%s2830_s6 + $0x94] sm:$0xf]  ;;  %v2497_v32 = vpack.c.bf16 %v2469_v19, %v2469_v19 }
  0x28   : > { %827 = vmatpush.bf16.msra.mxu3 %v1848_v47  ;;  %v1903_v26 = vld [vmem:[%s2830_s6 + $0xb0] sm:$0xf]  ;;  %v2067_v27 = vld [vmem:[%s2830_s6 + $0xb8] sm:$0xf0]  ;;  %v1885_v28 = vld [vmem:[%s2830_s6 + $0x9c] sm:$0xf0]  ;;  %v1720_v31 = vor.u32 %v2020_v20, %v1717_v21 }
  0x29   : > { %v1759_v29 = vld [vmem:[%s2829_s5 + $0x50] sm:$0xf]  ;;  %v2031_v30 = vld [vmem:[%s2829_s5 + $0x58] sm:$0xf0]  ;;  %v450_v33 = vld [vmem:[%s2290_s15] sm:$0xf]  ;;  %v1904_v34 = vor.u32 %v2067_v27, %v1903_v26  ;;  %v1888_v37 = vor.u32 %v2062_v25, %v1885_v28 }
  0x2a   : > { %632 = vmatpush.bf16.msra.mxu1 %v1756_v53  ;;  %643 = vmatpush.bf16.msra.mxu2 %v1784_v9  ;;  %v2059_v35 = vld [vmem:[%s2830_s6 + $0x7c] sm:$0xf]  ;;  %v1873_v36 = vld [vmem:[%s2830_s6 + $0x84] sm:$0xf0]  ;;  %v1891_v38 = vld [vmem:[%s2830_s6 + $0x98] sm:$0xf]  ;;  %v1760_v40 = vor.u32 %v2031_v30, %v1759_v29 }
  0x2b   : > { %620 = vmatpush.bf16.msra.mxu0 %v1740_v55  ;;  %v2064_v39 = vld [vmem:[%s2830_s6 + $0xa0] sm:$0xf0]  ;;  %v1747_v41 = vld [vmem:[%s2829_s5 + $0x38] sm:$0xf]  ;;  %v1876_v44 = vor.u32 %v2059_v35, %v1873_v36  ;;  %v1879_v46 = vld [vmem:[%s2830_s6 + $0x80] sm:$0xf] }
  0x2c   : > { %828 = vmatpush.bf16.msra.mxu3 %v1836_v59  ;;  %v2028_v42 = vld [vmem:[%s2829_s5 + $0x40] sm:$0xf0]  ;;  %v1892_v43 = vor.u32 %v2064_v39, %v1891_v38  ;;  %v2061_v47 = vld [vmem:[%s2830_s6 + $0x88] sm:$0xf0]  ;;  %v1861_v49 = vld [vmem:[%s2830_s6 + $0x6c] sm:$0xf0] }
  0x2d   : > { %v2056_v45 = vld [vmem:[%s2830_s6 + $0x64] sm:$0xf]  ;;  %v1748_v48 = vor.u32 %v2028_v42, %v1747_v41  ;;  %v1735_v50 = vld [vmem:[%s2829_s5 + $0x20] sm:$0xf]  ;;  %v2025_v51 = vld [vmem:[%s2829_s5 + $0x28] sm:$0xf0]  ;;  %v1880_v52 = vor.u32 %v2061_v47, %v1879_v46 }
  0x2e   : > { %633 = vmatpush.bf16.msra.mxu1 %v1744_v3  ;;  %644 = vmatpush.bf16.msra.mxu2 %v1772_v22  ;;  %v1864_v53 = vor.u32 %v2056_v45, %v1861_v49  ;;  %v2053_v54 = vld [vmem:[%s2830_s6 + $0x4c] sm:$0xf]  ;;  %v1867_v55 = vld [vmem:[%s2830_s6 + $0x68] sm:$0xf]  ;;  %v2058_v56 = vld [vmem:[%s2830_s6 + $0x70] sm:$0xf0]  ;;  %v1736_v57 = vor.u32 %v2025_v51, %v1735_v50 }
  0x2f   : > { %621 = vmatpush.bf16.msra.mxu0 %v1728_v5  ;;  %v1849_v58 = vld [vmem:[%s2830_s6 + $0x54] sm:$0xf0]  ;;  %v1723_v59 = vld [vmem:[%s2829_s5 + $0x8] sm:$0xf]  ;;  %v2022_v60 = vld [vmem:[%s2829_s5 + $0x10] sm:$0xf0]  ;;  %v1868_v61 = vor.u32 %v2058_v56, %v1867_v55 }
  0x30   : > { %829 = vmatpush.bf16.msra.mxu3 %v1824_v10  ;;  %v1852_v62 = vor.u32 %v2053_v54, %v1849_v58  ;;  %v1855_v63 = vld [vmem:[%s2830_s6 + $0x50] sm:$0xf]  ;;  %v2055_v0 = vld [vmem:[%s2830_s6 + $0x58] sm:$0xf0]  ;;  %v1724_v1 = vor.u32 %v2022_v60, %v1723_v59  ;;  %v2050_v2 = vld [vmem:[%s2830_s6 + $0x34] sm:$0xf] }
  0x31   : > { %v1837_v3 = vld [vmem:[%s2830_s6 + $0x3c] sm:$0xf0]  ;;  %v1856_v4 = vor.u32 %v2055_v0, %v1855_v63  ;;  %v1843_v6 = vld [vmem:[%s2830_s6 + $0x38] sm:$0xf]  ;;  %v2052_v7 = vld [vmem:[%s2830_s6 + $0x40] sm:$0xf0] }
  0x32   : > { %634 = vmatpush.bf16.msra.mxu1 %v1732_v17  ;;  %645 = vmatpush.bf16.msra.mxu2 %v1760_v40  ;;  %v1840_v5 = vor.u32 %v2050_v2, %v1837_v3  ;;  %v2047_v8 = vld [vmem:[%s2830_s6 + $0x1c] sm:$0xf]  ;;  %v1825_v9 = vld [vmem:[%s2830_s6 + $0x24] sm:$0xf0]  ;;  %v1844_v10 = vor.u32 %v2052_v7, %v1843_v6  ;;  %v1831_v12 = vld [vmem:[%s2830_s6 + $0x20] sm:$0xf] }
  0x33   : > { %622 = vmatpush.bf16.msra.mxu0 %v1716_v18  ;;  %v1828_v11 = vor.u32 %v2047_v8, %v1825_v9  ;;  %v2049_v13 = vld [vmem:[%s2830_s6 + $0x28] sm:$0xf0]  ;;  %v2044_v14 = vld [vmem:[%s2830_s6 + $0x4] sm:$0xf]  ;;  %v1813_v15 = vld [vmem:[%s2830_s6 + $0xc] sm:$0xf0] }
  0x34   : > { %830 = vmatpush.bf16.msra.mxu3 %v1812_v23  ;;  %v1832_v16 = vor.u32 %v2049_v13, %v1831_v12  ;;  %v1816_v17 = vor.u32 %v2044_v14, %v1813_v15  ;;  %v1819_v18 = vld [vmem:[%s2830_s6 + $0x8] sm:$0xf]  ;;  %v2046_v20 = vld [vmem:[%s2830_s6 + $0x10] sm:$0xf0]  ;;  %v687_v23 = vld [vmem:[%s2831_s7] sm:$0x7] }
  0x35   : > { %v1820_v21 = vor.u32 %v2046_v20, %v1819_v18  ;;  %v689_v26 = vperm.slane %v687_v23, 0  ;;  %v485_v38 = vld [vmem:[%s2828_s4 + $0x8] sm:$0xff]  ;;  %v690_v39 = vperm.slane %v687_v23, 1  ;;  %v911_v51 = vld [vmem:[%s2827_s3 + $0x4] sm:$0xf]  ;;  %v691_v60 = vperm.slane %v687_v23, 2 }
  0x36   : > { %635 = vmatpush.bf16.msra.mxu1 %v1720_v31  ;;  %623 = vmatmul.bf16.vlgmr.msra.gmra.mxu0 %v450_v33  ;;  %v1196_v54 = vsel %vm1175_vm1, %v911_v51, 0  ;;  %v2619_v56 = vld [vmem:[%s2827_s3 + $0x14] sm:$0xf]  ;;  %v2634_v8 = vld [vmem:[%s2827_s3 + $0x8] sm:$0xf]  ;;  %vm921_vm10 = vcmask 1040384  }
  0x37   : > { %836 = vmatpush.bf16.msrb.mxu0 %v1900_v24  ;;  %831 = vmatmul.bf16.vlgmr.msra.gmra.mxu3 %v2497_v32  ;;  %v484_v24 = vld [vmem:[%s2828_s4] sm:$0xff]  ;;  %vm930_vm11 = vcmask 1042434   ;;  %vm926_vm12 = vcmask 1041409   ;;  %vm934_vm13 = vcmask 1043459   ;;  %vm1074_vm14 = vcmask 57344   ;;  %s1654_s22 = sshll.u32 %s2837_s13, 4  ;;  %s1655_s22 = int_to_ptr.hbm [resolvable:$true] %s1654_s22 }
  0x38   : > { %646 = vmatpush.bf16.msra.mxu2 %v1748_v48  ;;  %972 = vmatpush.bf16.xpose.msrb.mxu3 %v911_v51  ;;  %vm1171_vm15 = vcmask 64512   ;;  %vm1449_vm0 = vcmask 1044484   ;;  %p2096_p5 = scmp.eq.s32.totalorder %s2281_s26, 6 }
  0x39   : > { %636 = vmatmul.bf16.vlgmr.msra.gmra.mxu1 %v450_v33 }
  0x3a   : > { %849 = vmatpush.bf16.msrb.mxu1 %v1904_v34 }
  0x3b   : > { %837 = vmatpush.bf16.msrb.mxu0 %v1888_v37 }
  0x3c   : > { %647 = vmatpush.bf16.msra.mxu2 %v1736_v57 }
  0x3e   : > { %850 = vmatpush.bf16.msrb.mxu1 %v1892_v43 }
  0x3f   : > { %838 = vmatpush.bf16.msrb.mxu0 %v1876_v44 }
  0x40   : > { %648 = vmatpush.bf16.msra.mxu2 %v1724_v1 }
  0x42   : > { %851 = vmatpush.bf16.msrb.mxu1 %v1880_v52  ;;  %v910_v52 = vld [vmem:[%s2827_s3] sm:$0xf] }
  0x43   : > { %839 = vmatpush.bf16.msrb.mxu0 %v1864_v53  ;;  %649 = vmatmul.bf16.vlgmr.msra.gmra.mxu2 %v450_v33  ;;  %v1177_v55 = vsel %vm1175_vm1, %v910_v52, 0 }
  0x44   : > { %956 = vmatpush.bf16.xpose.msrb.mxu2 %v910_v52 }
  0x46   : > { %852 = vmatpush.bf16.msrb.mxu1 %v1868_v61 }
  0x47   : > { %840 = vmatpush.bf16.msrb.mxu0 %v1852_v62 }
  0x4a   : > { %853 = vmatpush.bf16.msrb.mxu1 %v1856_v4  ;;  %v486_v4 = vld [vmem:[%s2828_s4 + $0x10] sm:$0xff] }
  0x4b   : > { %841 = vmatpush.bf16.msrb.mxu0 %v1840_v5  ;;  %v2628_v5 = vld [vmem:[%s2827_s3 + $0xc] sm:$0xf] }
  0x4c   : > { %1004 = vmatpush.bf16.xpose.msra.mxu3 %v2628_v5  ;;  %988 = vmatpush.bf16.xpose.msra.mxu2 %v2634_v8 }
  0x4e   : > { %854 = vmatpush.bf16.msrb.mxu1 %v1844_v10 }
  0x4f   : > { %842 = vmatpush.bf16.msrb.mxu0 %v1828_v11 }
  0x52   : > { %855 = vmatpush.bf16.msrb.mxu1 %v1832_v16 }
  0x53   : > { %843 = vmatpush.bf16.msrb.mxu0 %v1816_v17 }
  0x56   : > { %844 = vmatmul.bf16.vlgmr.msrb.gmra.mxu0 %v2497_v32  ;;  %856 = vmatpush.bf16.msrb.mxu1 %v1820_v21 }
  0x57   : > { %1186 = vmatpush.bf16.msra.mxu0 %v1177_v55 }
  0x59   : > { %857 = vmatmul.bf16.vlgmr.msrb.gmra.mxu1 %v2497_v32 }
  0x5a   : > { %1036 = vmatpush.bf16.xpose.msra.mxu1 %v2619_v56 }
  0x62   : > { %1205 = vmatpush.bf16.msrb.mxu1 %v1196_v54 }
  0xb3   : > { %v624_v22 = vpop.f32.mrf.mxu0 }
  0xb4   : > { %v625_v27 = vadd.f32 %v624_v22, %v484_v24 }
  0xb6   : > { %v637_v25 = vpop.f32.mrf.mxu1 }
  0xb7   : > { %v638_v40 = vadd.f32 %v637_v25, %v485_v38  ;;  %v2652_v38 = vld [vmem:[%s2827_s3 + $0x10] sm:$0xf] }
  0xba   : > { %v832_v28 = vpop.f32.mrf.mxu3 }
  0xbb   : > { %v833_v29 = vadd.f32 %v832_v28, %v689_v26  ;;  %v626_v30 = vpop.f32.mrf.mxu0 }
  0xbd   : > { %v862_v31 = vadd.f32 %v833_v29, %v625_v27 }
  0xbe   : > { %v639_v33 = vpop.f32.mrf.mxu1 }
  0xbf   : > { %v1905_v34 = vmul.f32 -1.442695, %v862_v31 }
  0xc1   : > { %2113 = vpow2.f32 %v1905_v34 }
  0xc2   : > { %v834_v32 = vpop.f32.mrf.mxu3 }
  0xc6   : > { %v650_v37 = vpop.f32.mrf.mxu2 }
  0xc7   : > { %v2114_v35 = vpop.eup %2113  ;;  %v651_v7 = vadd.f32 %v650_v37, %v486_v4 }
  0xc8   : > { %v866_v36 = vadd.f32 1.0, %v2114_v35 }
  0xca   : > { %2115 = vrcp.f32 %v866_v36  ;;  %vm872_vm2 = vweird.f32 %v866_v36  ;;  %v878_v58 = vand.u32 2147483648, %v866_v36  ;;  %v876_v61 = vand.u32 2147483647, %v866_v36 }
  0xcc   : > { %v879_v1 = vor.u32 1.1754944e-38, %v878_v58  ;;  %vm877_vm5 = vcmp.eq.f32.partialorder %v876_v61, 8.507059e+37 }
  0xce   : > { %v652_v45 = vpop.f32.mrf.mxu2 }
  0xd0   : > { %v2116_v41 = vpop.eup %2115 }
  0xd1   : > { %v868_v44 = vmul.f32 %v2116_v41, %v866_v36  ;;  %vm873_vm3 = vweird.f32 %v2116_v41 }
  0xd2   : > { %vm874_vm4 = vmor %vm872_vm2, %vm873_vm3  ;;  %vm1455_vm2 = vcmask 1046534   ;;  %vm1458_vm3 = vcmask 1047559  }
  0xd3   : > { %v845_v42 = vpop.f32.mrf.mxu0  ;;  %v869_v48 = vsub.f32 1.0, %v868_v44 }
  0xd4   : > { %v846_v43 = vadd.f32 %v845_v42, %v690_v39 }
  0xd5   : > { %v870_v50 = vmul.f32 %v2116_v41, %v869_v48 }
  0xd6   : > { %v882_v46 = vadd.f32 %v846_v43, %v638_v40  ;;  %v858_v47 = vpop.f32.mrf.mxu1 }
  0xd7   : > { %v871_v57 = vadd.f32 %v2116_v41, %v870_v50  ;;  %v859_v2 = vadd.f32 %v858_v47, %v691_v60  ;;  %v2661_v47 = vld [vmem:[%s2827_s3 + $0x1c] sm:$0xf] }
  0xd8   : > { %v1906_v49 = vmul.f32 -1.442695, %v882_v46 }
  0xd9   : > { %v875_v0 = vsel %vm874_vm4, %v2116_v41, %v871_v57 }
  0xda   : > { %2117 = vpow2.f32 %v1906_v49  ;;  %v880_v3 = vsel %vm877_vm5, %v879_v1, %v875_v0  ;;  %vm1644_vm5 = vcmask 0  }
  0xdb   : > { %v847_v53 = vpop.f32.mrf.mxu0  ;;  %v902_v6 = vmul.f32 %v880_v3, %v859_v2 }
  0xdd   : > { %v903_v11 = vadd.f32 %v902_v6, %v651_v7 }
  0xde   : > { %v860_v59 = vpop.f32.mrf.mxu1 }
  0xe0   : > { %v2118_v62 = vpop.eup %2117 }
  0xe1   : > { %v886_v63 = vadd.f32 1.0, %v2118_v62 }
  0xe3   : > { %2119 = vrcp.f32 %v886_v63  ;;  %v898_v13 = vand.u32 2147483648, %v886_v63  ;;  %v896_v15 = vand.u32 2147483647, %v886_v63  ;;  %vm892_vm7 = vweird.f32 %v886_v63 }
  0xe4   : > { %2121 = vtanh.f32 %v903_v11 }
  0xe5   : > { %v899_v17 = vor.u32 1.1754944e-38, %v898_v13  ;;  %vm897_vm9 = vcmp.eq.f32.partialorder %v896_v15, 8.507059e+37 }
  0xe9   : > { %v2120_v9 = vpop.eup %2119 }
  0xea   : > { %v888_v10 = vmul.f32 %v2120_v9, %v886_v63  ;;  %vm893_vm6 = vweird.f32 %v2120_v9  ;;  %v2122_v22 = vpop.eup %2121 }
  0xeb   : > { %vm894_vm8 = vmor %vm892_vm7, %vm893_vm6 }
  0xec   : > { %v889_v12 = vsub.f32 1.0, %v888_v10 }
  0xee   : > { %v890_v14 = vmul.f32 %v2120_v9, %v889_v12 }
  0xf0   : > { %v891_v16 = vadd.f32 %v2120_v9, %v890_v14 }
  0xf2   : > { %v895_v18 = vsel %vm894_vm8, %v2120_v9, %v891_v16 }
  0xf3   : > { %v900_v20 = vsel %vm897_vm9, %v899_v17, %v895_v18 }
  0xf4   : > { %v905_v21 = vsub.f32 1.0, %v900_v20  ;;  %v907_v24 = vmul.f32 %v900_v20, %v2469_v19  ;;  %v2647_v19 = vld [vmem:[%s2827_s3 + $0x18] sm:$0xf] }
  0xf6   : > { %v906_v23 = vmul.f32 %v2122_v22, %v905_v21 }
  0xf8   : > { %v908_v25 = vadd.f32 %v907_v24, %v906_v23 }
  0xfa   : > { %909 = vst [vmem:[#allocation2] sm:$0xff] %v908_v25  ;;  %v2638_v26 = vpack.c.bf16 %v908_v25, %v908_v25 }
  0xfc   : > { %v920_v27 = vrot.slane %v2638_v26, 3 }
  0xfe   : > { %v924_v28 = vsel %vm921_vm10, %v2638_v26, %v920_v27  ;;  %v931_v29 = vsel %vm930_vm11, %v2638_v26, %v920_v27  ;;  %v927_v39 = vsel %vm926_vm12, %v2638_v26, %v920_v27  ;;  %v935_v48 = vsel %vm934_vm13, %v2638_v26, %v920_v27 }
  0xff   : > { %v1907_v30 = vpack.i.b16 %v924_v28, %v924_v28  ;;  %v939_v31 = vunpack.i.h.s16 %v924_v28  ;;  %v933_v33 = vrot.slane %v931_v29, 2  ;;  %v929_v41 = vrot.slane %v927_v39, 1 }
 0x100   : > { %v937_v49 = vrot.slane %v935_v48, 3 }
 0x101   : > { %v947_v34 = vperm.slane %v1907_v30, 0  ;;  %v962_v32 = vpack.i.b16 %v939_v31, %v939_v31  ;;  %v943_v35 = vunpack.i.h.s16 %v933_v33  ;;  %v941_v42 = vunpack.i.h.s16 %v929_v41 }
 0x102   : > { %v1908_v43 = vpack.i.b16 %v929_v41, %v929_v41  ;;  %v1910_v50 = vpack.i.b16 %v937_v49, %v937_v49  ;;  %v1909_v51 = vpack.i.b16 %v933_v33, %v933_v33  ;;  %v945_v54 = vunpack.i.h.s16 %v937_v49 }
 0x103   : > { %957 = vmatmul.bf16.vlgmr.msrb.gmra.mxu2 %v947_v34  ;;  %v963_v36 = vperm.slane %v962_v32, 0  ;;  %v1026_v37 = vpack.i.b16 %v943_v35, %v943_v35  ;;  %v994_v44 = vpack.i.b16 %v941_v42, %v941_v42 }
 0x104   : > { %1052 = vmatpush.bf16.xpose.msrb.mxu2 %v2647_v19  ;;  %v979_v45 = vperm.slane %v1908_v43, 0  ;;  %v1043_v52 = vperm.slane %v1910_v50, 0  ;;  %v1011_v53 = vperm.slane %v1909_v51, 0  ;;  %v1058_v55 = vpack.i.b16 %v945_v54, %v945_v54 }
 0x105   : > { %973 = vmatmul.bf16.vlgmr.msrb.gmra.mxu3 %v963_v36  ;;  %v1027_v40 = vperm.slane %v1026_v37, 0  ;;  %v995_v46 = vperm.slane %v994_v44, 0 }
 0x106   : > { %1020 = vmatpush.bf16.xpose.msrb.mxu3 %v2652_v38  ;;  %v1059_v57 = vperm.slane %v1058_v55, 0 }
 0x107   : > { %1037 = vmatmul.bf16.vlgmr.msra.gmra.mxu1 %v1027_v40 }
 0x113   : > { %989 = vmatmul.bf16.vlgmr.msra.gmra.mxu2 %v979_v45 }
 0x115   : > { %1005 = vmatmul.bf16.vlgmr.msra.gmra.mxu3 %v995_v46 }
 0x116   : > { %1068 = vmatpush.bf16.xpose.msra.mxu3 %v2661_v47 }
 0x123   : > { %1053 = vmatmul.bf16.vlgmr.msrb.gmra.mxu2 %v1043_v52 }
 0x125   : > { %1021 = vmatmul.bf16.vlgmr.msrb.gmra.mxu3 %v1011_v53 }
 0x135   : > { %1069 = vmatmul.bf16.vlgmr.msra.gmra.mxu3 %v1059_v57 }
 0x184   : > { %v2666_v58 = vpop.f32.mrf.mxu1 }
 0x185   : > { %v1090_v4 = vsel %vm1074_vm14, %v2666_v58, -inf }
 0x186   : > { %v958_v59 = vpop.f32.mrf.mxu2 }
 0x187   : > { %v1075_v60 = vsel %vm1074_vm14, %v958_v59, -inf }
 0x188   : > { %1076 = vmax.xlane.f32.xlu1 %v1075_v60  ;;  %v974_v61 = vpop.f32.mrf.mxu3 }
 0x189   : > { %v1078_v0 = vsel %vm1074_vm14, %v974_v61, -inf }
 0x18c   : > { %v1040_v62 = vpop.f32.mrf.mxu1 }
 0x18e   : > { %v960_v63 = vpop.f32.mrf.mxu2 }
 0x190   : > { %1079 = vmax.xlane.f32.xlu1 %v1078_v0  ;;  %v976_v1 = vpop.f32.mrf.mxu3 }
 0x191   : > { %v1215_v1 = vsel %vm1175_vm1, %v2634_v8, 0  ;;  %v1291_v8 = vsel %vm1175_vm1, %v2647_v19, 0  ;;  %v1310_v19 = vsel %vm1175_vm1, %v2661_v47, 0  ;;  %v2078_v47 = vld [vmem:[%s2833_s9 + $0x10] sm:$0xff] }
 0x192   : > { %1224 = vmatpush.bf16.msra.mxu2 %v1215_v1 }
 0x196   : > { %v990_v2 = vpop.f32.mrf.mxu2  ;;  %1300 = vmatpush.bf16.msrb.mxu2 %v1291_v8 }
 0x197   : > { %v1081_v3 = vsel %vm1074_vm14, %v990_v2, -inf }
 0x198   : > { %1082 = vmax.xlane.f32.xlu0 %v1081_v3  ;;  %1091 = vmax.xlane.f32.xlu1 %v1090_v4  ;;  %v1006_v6 = vpop.f32.mrf.mxu3  ;;  %v1234_v4 = vsel %vm1175_vm1, %v2628_v5, 0  ;;  %v2082_v5 = vld [vmem:[%s2833_s9 + $0x30] sm:$0xff] }
 0x199   : > { %v1084_v9 = vsel %vm1074_vm14, %v1006_v6, -inf  ;;  %1243 = vmatpush.bf16.msrb.mxu3 %v1234_v4 }
 0x19d   : > { %1319 = vmatpush.bf16.msra.mxu3 %v1310_v19 }
 0x19e   : > { %v992_v7 = vpop.f32.mrf.mxu2 }
 0x1a0   : > { %1085 = vmax.xlane.f32.xlu0 %v1084_v9  ;;  %v1008_v10 = vpop.f32.mrf.mxu3  ;;  %v2083_v9 = vld [vmem:[%s2833_s9 + $0x38] sm:$0xff] }
 0x1a6   : > { %v1054_v11 = vpop.f32.mrf.mxu2 }
 0x1a7   : > { %v1093_v12 = vsel %vm1074_vm14, %v1054_v11, -inf }
 0x1a8   : > { %1094 = vmax.xlane.f32.xlu2 %v1093_v12  ;;  %v1022_v13 = vpop.f32.mrf.mxu3  ;;  %v1272_v12 = vsel %vm1175_vm1, %v2619_v56, 0  ;;  %v2079_v56 = vld [vmem:[%s2833_s9 + $0x18] sm:$0xff] }
 0x1a9   : > { %v1087_v14 = vsel %vm1074_vm14, %v1022_v13, -inf  ;;  %1281 = vmatpush.bf16.msra.mxu1 %v1272_v12 }
 0x1aa   : > { %1088 = vmax.xlane.f32.xlu0 %v1087_v14 }
 0x1ae   : > { %v1056_v15 = vpop.f32.mrf.mxu2 }
 0x1b0   : > { %v1024_v16 = vpop.f32.mrf.mxu3 }
 0x1b8   : > { %v1070_v17 = vpop.f32.mrf.mxu3 }
 0x1b9   : > { %v1096_v18 = vsel %vm1074_vm14, %v1070_v17, -inf }
 0x1ba   : > { %1097 = vmax.xlane.f32.xlu2 %v1096_v18 }
 0x1c0   : > { %v1072_v20 = vpop.f32.mrf.mxu3 }
 0x1fb   : > { %v1077_v21 = vpop.xlane.xlu1 %1076 }
 0x1fc   : > { %v1099_v22 = vsub.f32 %v958_v59, %v1077_v21 }
 0x1fe   : > { %v1107_v23 = vmul.f32 1.442695, %v1099_v22 }
 0x200   : > { %2123 = vpow2.f32 %v1107_v23 }
 0x203   : > { %v1080_v27 = vpop.xlane.xlu1 %1079 }
 0x204   : > { %v1100_v30 = vsub.f32 %v974_v61, %v1080_v27 }
 0x206   : > { %v2124_v24 = vpop.eup %2123  ;;  %v1109_v33 = vmul.f32 1.442695, %v1100_v30  ;;  %v2076_v30 = vld [vmem:[%s2833_s9] sm:$0xff] }
 0x207   : > { %v1123_v25 = vsel %vm1074_vm14, %v2124_v24, 0.0 }
 0x208   : > { %1124 = vadd.xlane.f32.xlu1 %v1123_v25  ;;  %v2077_v25 = vld [vmem:[%s2833_s9 + $0x8] sm:$0xff] }
 0x20b   : > { %v1083_v28 = vpop.xlane.xlu0 %1082  ;;  %v1092_v39 = vpop.xlane.xlu1 %1091 }
 0x20c   : > { %v1101_v29 = vsub.f32 %v990_v2, %v1083_v28  ;;  %v1104_v45 = vsub.f32 %v2666_v58, %v1092_v39  ;;  %v1253_v2 = vsel %vm1175_vm1, %v2652_v38, 0  ;;  %vm1452_vm1 = vcmask 1045509  }
 0x20d   : > { %1262 = vmatpush.bf16.msrb.mxu0 %v1253_v2 }
 0x20e   : > { %v1111_v31 = vmul.f32 1.442695, %v1101_v29  ;;  %v1117_v52 = vmul.f32 1.442695, %v1104_v45 }
 0x210   : > { %2125 = vpow2.f32 %v1111_v31 }
 0x211   : > { %2127 = vpow2.f32 %v1109_v33 }
 0x213   : > { %v1086_v34 = vpop.xlane.xlu0 %1085 }
 0x214   : > { %v1102_v32 = vsub.f32 %v1006_v6, %v1086_v34 }
 0x216   : > { %v2678_v35 = vpop.eup %2125  ;;  %v1113_v36 = vmul.f32 1.442695, %v1102_v32 }
 0x217   : > { %v1129_v37 = vsel %vm1074_vm14, %v2678_v35, 0.0  ;;  %v2682_v41 = vpop.eup %2127 }
 0x218   : > { %2129 = vpow2.f32 %v1113_v36  ;;  %1130 = vadd.xlane.f32.xlu2 %v1129_v37  ;;  %v1126_v50 = vsel %vm1074_vm14, %v2682_v41, 0.0 }
 0x21b   : > { %v1095_v40 = vpop.xlane.xlu2 %1094 }
 0x21c   : > { %v1105_v42 = vsub.f32 %v1054_v11, %v1095_v40  ;;  %v2081_v11 = vld [vmem:[%s2833_s9 + $0x28] sm:$0xff] }
 0x21d   : > { %v1089_v43 = vpop.xlane.xlu0 %1088 }
 0x21e   : > { %v2684_v44 = vpop.eup %2129  ;;  %v1119_v46 = vmul.f32 1.442695, %v1105_v42  ;;  %v1103_v48 = vsub.f32 %v1022_v13, %v1089_v43  ;;  %v2080_v13 = vld [vmem:[%s2833_s9 + $0x20] sm:$0xff] }
 0x21f   : > { %v1132_v49 = vsel %vm1074_vm14, %v2684_v44, 0.0 }
 0x220   : > { %2131 = vpow2.f32 %v1119_v46  ;;  %v1115_v51 = vmul.f32 1.442695, %v1103_v48  ;;  %1133 = vadd.xlane.f32.xlu0 %v1132_v49  ;;  %1127 = vadd.xlane.f32.xlu2 %v1126_v50  ;;  %v2075_v48 = vld [vmem:[%s2832_s8 + $0x38] sm:$0xff]  ;;  %v2074_v49 = vld [vmem:[%s2832_s8 + $0x30] sm:$0xff] }
 0x222   : > { %2133 = vpow2.f32 %v1115_v51  ;;  %v2073_v51 = vld [vmem:[%s2832_s8 + $0x28] sm:$0xff] }
 0x223   : > { %2135 = vpow2.f32 %v1117_v52  ;;  %v2071_v52 = vld [vmem:[%s2832_s8 + $0x18] sm:$0xff] }
 0x226   : > { %v2691_v53 = vpop.eup %2131 }
 0x227   : > { %v1141_v54 = vsel %vm1074_vm14, %v2691_v53, 0.0 }
 0x228   : > { %v2695_v55 = vpop.eup %2133  ;;  %1142 = vadd.xlane.f32.xlu0 %v1141_v54 }
 0x229   : > { %v1135_v57 = vsel %vm1074_vm14, %v2695_v55, 0.0  ;;  %v2699_v58 = vpop.eup %2135 }
 0x22a   : > { %1136 = vadd.xlane.f32.xlu2 %v1135_v57  ;;  %v1138_v61 = vsel %vm1074_vm14, %v2699_v58, 0.0  ;;  %v2069_v57 = vld [vmem:[%s2832_s8 + $0x8] sm:$0xff] }
 0x22d   : > { %v1098_v59 = vpop.xlane.xlu2 %1097 }
 0x22e   : > { %v1106_v60 = vsub.f32 %v1070_v17, %v1098_v59 }
 0x230   : > { %v1121_v62 = vmul.f32 1.442695, %v1106_v60  ;;  %1139 = vadd.xlane.f32.xlu0 %v1138_v61  ;;  %v2068_v60 = vld [vmem:[%s2832_s8] sm:$0xff] }
 0x232   : > { %2137 = vpow2.f32 %v1121_v62 }
 0x238   : > { %v2703_v63 = vpop.eup %2137 }
 0x239   : > { %v1144_v0 = vsel %vm1074_vm14, %v2703_v63, 0.0 }
 0x23a   : > { %1145 = vadd.xlane.f32.xlu1 %v1144_v0  ;;  %v2090_v0 = vld [vmem:[%s2835_s11 + $0x30] sm:$0xff] }
 0x27b   : > { %v1125_v3 = vpop.xlane.xlu1 %1124 }
 0x27c   : > { %2139 = vrcp.f32 %v1125_v3  ;;  %v2089_v3 = vld [vmem:[%s2835_s11 + $0x28] sm:$0xff] }
 0x282   : > { %v2140_v6 = vpop.eup %2139 }
 0x283   : > { %v1155_v7 = vmul.f32 %v2140_v6, %v2124_v24 }
 0x285   : > { %v1163_v10 = vpack.c.bf16 %v1155_v7, %v1155_v7 }
 0x287   : > { %1911 = vmatmul.msk.bf16.vlgmr.msra.gmra.mxu0 %vm1171_vm15, %v1163_v10 }
 0x288   : > { %1413 = vmatpush.bf16.msra.mxu0 %v2083_v9  ;;  %v2088_v9 = vld [vmem:[%s2835_s11 + $0x20] sm:$0xff] }
 0x28b   : > { %v1131_v38 = vpop.xlane.xlu2 %1130 }
 0x28c   : > { %2141 = vrcp.f32 %v1131_v38  ;;  %1414 = vmatpush.bf16.msra.mxu0 %v2082_v5 }
 0x290   : > { %1415 = vmatpush.bf16.msra.mxu0 %v2081_v11 }
 0x292   : > { %v2142_v14 = vpop.eup %2141 }
 0x293   : > { %v1157_v15 = vmul.f32 %v2142_v14, %v2678_v35  ;;  %v1134_v16 = vpop.xlane.xlu0 %1133  ;;  %v1128_v17 = vpop.xlane.xlu2 %1127 }
 0x294   : > { %2143 = vrcp.f32 %v1134_v16  ;;  %1416 = vmatpush.bf16.msra.mxu0 %v2080_v13  ;;  %v2087_v13 = vld [vmem:[%s2835_s11 + $0x18] sm:$0xff] }
 0x295   : > { %v1165_v18 = vpack.c.bf16 %v1157_v15, %v1157_v15  ;;  %2145 = vrcp.f32 %v1128_v17 }
 0x297   : > { %1913 = vmatmul.msk.bf16.vlgmr.msra.gmra.mxu2 %vm1171_vm15, %v1165_v18 }
 0x298   : > { %1417 = vmatpush.bf16.msra.mxu0 %v2079_v56 }
 0x29a   : > { %v2144_v20 = vpop.eup %2143 }
 0x29b   : > { %v2146_v21 = vpop.eup %2145  ;;  %v1158_v22 = vmul.f32 %v2144_v20, %v2684_v44  ;;  %v1143_v23 = vpop.xlane.xlu0 %1142 }
 0x29c   : > { %v1156_v24 = vmul.f32 %v2146_v21, %v2682_v41  ;;  %2147 = vrcp.f32 %v1143_v23  ;;  %1418 = vmatpush.bf16.msra.mxu0 %v2078_v47 }
 0x29d   : > { %v1166_v27 = vpack.c.bf16 %v1158_v22, %v1158_v22  ;;  %v1137_v28 = vpop.xlane.xlu2 %1136 }
 0x29e   : > { %v1164_v29 = vpack.c.bf16 %v1156_v24, %v1156_v24  ;;  %2149 = vrcp.f32 %v1137_v28 }
 0x29f   : > { %1914 = vmatmul.msk.bf16.vlgmr.msrb.gmra.mxu3 %vm1171_vm15, %v1166_v27 }
 0x2a0   : > { %1912 = vmatmul.msk.bf16.vlgmr.msrb.gmra.mxu1 %vm1171_vm15, %v1164_v29  ;;  %1419 = vmatpush.bf16.msra.mxu0 %v2077_v25 }
 0x2a1   : > { %1510 = vmatpush.bf16.msrb.mxu1 %v2075_v48  ;;  %v2111_v48 = vld [vmem:[%s2834_s10] ss:$0 sm:$0xff] }
 0x2a2   : > { %v2148_v31 = vpop.eup %2147 }
 0x2a3   : > { %v1161_v33 = vmul.f32 %v2148_v31, %v2691_v53  ;;  %v1140_v34 = vpop.xlane.xlu0 %1139  ;;  %v2070_v53 = vld [vmem:[%s2832_s8 + $0x10] sm:$0xff] }
 0x2a4   : > { %v2150_v32 = vpop.eup %2149  ;;  %2151 = vrcp.f32 %v1140_v34  ;;  %1420 = vmatpush.bf16.msra.mxu0 %v2076_v30 }
 0x2a5   : > { %v1169_v35 = vpack.c.bf16 %v1161_v33, %v1161_v33  ;;  %v1159_v36 = vmul.f32 %v2150_v32, %v2695_v55  ;;  %1511 = vmatpush.bf16.msrb.mxu1 %v2074_v49 }
 0x2a7   : > { %v1167_v37 = vpack.c.bf16 %v1159_v36, %v1159_v36  ;;  %1917 = vmatmul.msk.bf16.vlgmr.msrb.gmra.mxu2 %vm1171_vm15, %v1169_v35 }
 0x2a9   : > { %1915 = vmatmul.msk.bf16.vlgmr.msrb.gmra.mxu0 %vm1171_vm15, %v1167_v37  ;;  %1512 = vmatpush.bf16.msrb.mxu1 %v2073_v51 }
 0x2aa   : > { %v2152_v39 = vpop.eup %2151 }
 0x2ab   : > { %v1160_v40 = vmul.f32 %v2152_v39, %v2699_v58 }
 0x2ad   : > { %v1168_v41 = vpack.c.bf16 %v1160_v40, %v1160_v40  ;;  %v1146_v42 = vpop.xlane.xlu1 %1145 }
 0x2ae   : > { %2153 = vrcp.f32 %v1146_v42 }
 0x2b0   : > { %1916 = vmatmul.msk.bf16.vlgmr.msra.gmra.mxu1 %vm1171_vm15, %v1168_v41 }
 0x2b4   : > { %v2154_v43 = vpop.eup %2153 }
 0x2b5   : > { %v1162_v44 = vmul.f32 %v2154_v43, %v2703_v63  ;;  %v2091_v63 = vld [vmem:[%s2835_s11 + $0x38] sm:$0xff] }
 0x2b6   : > { %1598 = vmatpush.bf16.msra.mxu2 %v2091_v63 }
 0x2b7   : > { %v1170_v45 = vpack.c.bf16 %v1162_v44, %v1162_v44  ;;  %v2086_v44 = vld [vmem:[%s2835_s11 + $0x10] sm:$0xff] }
 0x2b9   : > { %1918 = vmatmul.msk.bf16.vlgmr.msra.gmra.mxu3 %vm1171_vm15, %v1170_v45  ;;  %1421 = vmatmul.bf16.vlgmr.msra.gmra.mxu0 %v2638_v26  ;;  %v2072_v26 = vld [vmem:[%s2832_s8 + $0x20] sm:$0xff]  ;;  %v2085_v45 = vld [vmem:[%s2835_s11 + $0x8] sm:$0xff] }
 0x2ba   : > { %1513 = vmatpush.bf16.msrb.mxu1 %v2072_v26  ;;  %1599 = vmatpush.bf16.msra.mxu2 %v2090_v0 }
 0x2be   : > { %1514 = vmatpush.bf16.msrb.mxu1 %v2071_v52  ;;  %1600 = vmatpush.bf16.msra.mxu2 %v2089_v3 }
 0x2c2   : > { %1515 = vmatpush.bf16.msrb.mxu1 %v2070_v53  ;;  %1601 = vmatpush.bf16.msra.mxu2 %v2088_v9 }
 0x2c6   : > { %1516 = vmatpush.bf16.msrb.mxu1 %v2069_v57  ;;  %1602 = vmatpush.bf16.msra.mxu2 %v2087_v13 }
 0x2ca   : > { %1517 = vmatpush.bf16.msrb.mxu1 %v2068_v60  ;;  %1603 = vmatpush.bf16.msra.mxu2 %v2086_v44  ;;  %v2202_v60 = vmov 0  }
 0x2cb   : > { %2110 = vset.pattern.permute.xlu0 %v2202_v60 }
 0x2ce   : > { %1604 = vmatpush.bf16.msra.mxu2 %v2085_v45 }
 0x304   : > { %v1188_v46 = vpop.f32.mrf.mxu0 }
 0x305   : > { %v1325_v12 = vpack.c.bf16 %v1188_v46, %v1188_v46  ;;  %v2084_v46 = vld [vmem:[%s2835_s11] sm:$0xff] }
 0x306   : > { %1605 = vmatpush.bf16.msra.mxu2 %v2084_v46 }
 0x307   : > { %v1434_v47 = vunpack.c.l.b16 %v1325_v12 }
 0x30c   : > { %v1190_v50 = vpop.f32.mrf.mxu0 }
 0x31a   : > { %v1226_v54 = vpop.f32.mrf.mxu2 }
 0x31b   : > { %v1327_v5 = vpack.c.bf16 %v1226_v54, %v1226_v54  ;;  %v2112_v54 = vld [vmem:[%s2836_s12] ss:$0 sm:$0xff] }
 0x31d   : > { %v1207_v55 = vpop.f32.mrf.mxu1  ;;  %v1436_v17 = vunpack.c.l.b16 %v1327_v5 }
 0x31e   : > { %v1326_v4 = vpack.c.bf16 %v1207_v55, %v1207_v55 }
 0x31f   : > { %v1444_v24 = vrot.slane %v1436_v17, 6 }
 0x320   : > { %v1435_v8 = vunpack.c.l.b16 %v1326_v4 }
 0x322   : > { %v1228_v58 = vpop.f32.mrf.mxu2  ;;  %v1245_v59 = vpop.f32.mrf.mxu3  ;;  %v1442_v14 = vrot.slane %v1435_v8, 7  ;;  %v2203_v8 = vmov 0.0  }
 0x323   : > { %v1328_v10 = vpack.c.bf16 %v1245_v59, %v1245_v59  ;;  %v1622_v59 = vld [vmem:[%s2295_s18] sm:$0xff]  ;;  %s2204_s18 = smov [#allocation3]  }
 0x324   : > { %v1443_v22 = vsel %vm926_vm12, %v1442_v14, %v1434_v47  ;;  %1626 = vperm.xlu0 %2110, %v1622_v59   ;;  %s1652_s19 = sshll.u32 %s2204_s18, 4  ;;  %s1653_s19 = int_to_ptr.vmem [resolvable:$true] %s1652_s19 }
 0x325   : > { %v1209_v61 = vpop.f32.mrf.mxu1  ;;  %v1437_v15 = vunpack.c.l.b16 %v1328_v10  ;;  %v1445_v28 = vsel %vm930_vm11, %v1444_v24, %v1443_v22 }
 0x326   : > { %v1264_v62 = vpop.f32.mrf.mxu0 }
 0x327   : > { %v1329_v38 = vpack.c.bf16 %v1264_v62, %v1264_v62  ;;  %v1446_v23 = vrot.slane %v1437_v15, 5 }
 0x329   : > { %v1438_v56 = vunpack.c.l.b16 %v1329_v38  ;;  %v1447_v31 = vsel %vm934_vm13, %v1446_v23, %v1445_v28 }
 0x32a   : > { %v1247_v1 = vpop.f32.mrf.mxu3  ;;  %v1302_v2 = vpop.f32.mrf.mxu2 }
 0x32b   : > { %v1331_v21 = vpack.c.bf16 %v1302_v2, %v1302_v2  ;;  %v1448_v25 = vrot.slane %v1438_v56, 4  ;;  %v1623_v2 = vlaneseq  ;;  %v1642_v56 = vld [vmem:[#allocation3] sm:$0x1] }
 0x32d   : > { %v1283_v6 = vpop.f32.mrf.mxu1  ;;  %v1440_v29 = vunpack.c.l.b16 %v1331_v21  ;;  %v1450_v34 = vsel %vm1449_vm0, %v1448_v25, %v1447_v31  ;;  %v1624_v3 = vand.u32 127, %v1623_v2 }
 0x32e   : > { %v1266_v7 = vpop.f32.mrf.mxu0  ;;  %v1330_v19 = vpack.c.bf16 %v1283_v6, %v1283_v6 }
 0x32f   : > { %v1454_v37 = vrot.slane %v1440_v29, 2 }
 0x330   : > { %v1439_v20 = vunpack.c.l.b16 %v1330_v19 }
 0x332   : > { %v1304_v11 = vpop.f32.mrf.mxu2  ;;  %v1451_v27 = vrot.slane %v1439_v20, 3 }
 0x334   : > { %v1453_v35 = vsel %vm1452_vm1, %v1451_v27, %v1450_v34 }
 0x335   : > { %v1285_v16 = vpop.f32.mrf.mxu1  ;;  %v1456_v40 = vsel %vm1455_vm2, %v1454_v37, %v1453_v35 }
 0x336   : > { %v1422_v18 = vpop.f32.mrf.mxu0 }
 0x33c   : > { %v1321_v30 = vpop.f32.mrf.mxu3 }
 0x33d   : > { %v1332_v33 = vpack.c.bf16 %v1321_v30, %v1321_v30 }
 0x33e   : > { %v1424_v32 = vpop.f32.mrf.mxu0 }
 0x33f   : > { %v1441_v36 = vunpack.c.l.b16 %v1332_v33 }
 0x341   : > { %v1457_v39 = vrot.slane %v1441_v36, 1 }
 0x343   : > { %v1459_v41 = vsel %vm1458_vm3, %v1457_v39, %v1456_v40 }
 0x344   : > { %v1460_v42 = vpack.c.b16 %v1459_v41, %v1459_v41  ;;  %v1323_v43 = vpop.f32.mrf.mxu3 }
 0x346   : > { %1518 = vmatmul.bf16.vlgmr.msrb.gmra.mxu1 %v1460_v42 }
 0x396   : > { %v1627_v4 = vpop.permute.xlu0 %1626 }
 0x397   : > { %vm1628_vm4 = vcmp.eq.s32.totalorder %v1624_v3, %v1627_v4 }
 0x398   : > { %v2015_v10 = vsel %vm1628_vm4, 1.0, %v2203_v8 }
 0x3c3   : > { %v1519_v49 = vpop.f32.mrf.mxu1 }
 0x3c4   : > { %v1520_v50 = vadd.f32 %v1519_v49, %v1422_v18 }
 0x3c6   : > { %v1527_v51 = vadd.f32 %v2111_v48, %v1520_v50 }
 0x3c8   : > { %2155 = vtanh.f32 %v1527_v51 }
 0x3cb   : > { %v1521_v26 = vpop.f32.mrf.mxu1 }
 0x3ce   : > { %v2156_v52 = vpop.eup %2155 }
 0x3cf   : > { %v1529_v53 = vpack.c.bf16 %v2156_v52, %v2156_v52 }
 0x3d1   : > { %1606 = vmatmul.bf16.vlgmr.msra.gmra.mxu2 %v1529_v53 }
 0x454   : > { %v1607_v55 = vpop.f32.mrf.mxu2 }
 0x455   : > { %v1608_v57 = vadd.f32 %v2112_v54, %v1607_v55 }
 0x457   : > { %1611 = vmax.xlane.f32.xlu1 %v1608_v57 }
 0x45c   : > { %v1609_v58 = vpop.f32.mrf.mxu2 }
 0x4ca   : > { %v1612_v61 = vpop.xlane.xlu1 %1611 }
 0x4cb   : > { %v1613_v62 = vsub.f32 %v1608_v57, %v1612_v61 }
 0x4cd   : > { %v1614_v63 = vmul.f32 1.442695, %v1613_v62 }
 0x4cf   : > { %2157 = vpow2.f32 %v1614_v63 }
 0x4d5   : > { %v2158_v0 = vpop.eup %2157 }
 0x4d6   : > { %1616 = vadd.xlane.f32.xlu2 %v2158_v0 }
 0x549   : > { %v1617_v1 = vpop.xlane.xlu2 %1616 }
 0x54a   : > { %2159 = vlog2.f32 %v1617_v1 }
 0x550   : > { %v2160_v6 = vpop.eup %2159 }
 0x551   : > { %v1619_v7 = vmul.f32 0.6931472, %v2160_v6 }
 0x553   : > { %v1620_v9 = vadd.f32 %v1619_v7, %v1612_v61 }
 0x555   : > { %v1621_v5 = vsub.f32 %v1608_v57, %v1620_v9 }
 0x557   : > { %v1631_v38 = vmul.f32 %v2015_v10, %v1621_v5 }
 0x559   : > { %1632 = vadd.xlane.f32.xlu1 %v1631_v38 }
 0x5cc   : > { %v1633_v11 = vpop.xlane.xlu1 %1632 }
 0x5cd   : > { %v1634_v12 = vsub.f32 0.0, %v1633_v11 }
 0x5cf   : > { %v1635_v19 = vrot.slane %v1634_v12, 4 }
 0x5d1   : > { %v1636_v13 = vadd.f32 %v1635_v19, %v1634_v12 }
 0x5d3   : > { %v1637_v14 = vrot.slane %v1636_v13, 2 }
 0x5d5   : > { %v1638_v15 = vadd.f32 %v1637_v14, %v1636_v13 }
 0x5d7   : > { %v1639_v16 = vrot.slane %v1638_v15, 1 }
 0x5d9   : > { %v1640_v17 = vadd.f32 %v1639_v16, %v1638_v15 }
 0x5db   : > { %v1641_v18 = vmul.f32 0.125, %v1640_v17 }
 0x5dd   : > { %v1643_v47 = vadd.f32 %v1642_v56, %v1641_v18 }
 0x5df   : > { %1645 = vst.msk [vmem:[#allocation3] sm:$0x1] %vm1644_vm5, %v1643_v47 }
 0x5e0   : > { %2093 = dma.vmem_to_hbm [thread:$0]  (%p2096_p5), %s1653_s19, 16, %s1655_s22, [#allocation4]  }
 0x5e1   : > { %2194 = dma.done.wait (%p2096_p5), [#allocation4], 16  }
 0x5e2   : > { %2196 = vsyncadd (%p2096_p5), [#allocation4], 4294967280 }
 0x5e3 PF: > { %s24_s25 = sadd.s32 1, %s2199_s25  }
 0x5e4   : > { %p21_p6 = scmp.ge.s32.totalorder %s24_s25, 9  }
 0x5e6   :  { %23 = sbr.rel (!%p21_p6) target bundleno = 1 (0x1), region = 106 }
 0x5eb   :  { %1668 = vsyncpa [#allocation4], 1 }
 0x5ec   :  { %1670 = vsyncpa [#allocation4 + $0x1], 1 }

</bundles_post_ra>
